<compile_context>
chip_gen: v5e
topology: v5e:2x2
jax: 0.10.0
libtpu: 0.0.40
codegen_flags: <defaults>
</compile_context>

<pallas_src>
import functools

import jax
import jax.numpy as jnp
from jax.experimental import pallas as pl
from jax.experimental.pallas import tpu as pltpu

_COMPUTE_DTYPE = jnp.bfloat16   # MXU input dtype (weights / activations)
_ACC_DTYPE = jnp.float32        # accumulation / gates / softmax dtype


# ----------------------------------------------------------------------------
# Pallas kernel: one decode step; grid axis 0 = decode time step t
# ----------------------------------------------------------------------------
def _decoder_kernel(n_layers, hidden_dim,
                    emb_ref, enc_ref, h0_ref, watt_t_ref,
                    wih0_e_ref, wih0_c_ref, *rest):
    """Inputs (VMEM refs, weights resident across the whole grid):
      emb_ref    : (1, B, E) bf16  pre-gathered embedding rows for step t
      enc_ref    : (B, S, H) bf16  encoder outputs (batch-major)
      h0_ref     : (L, B, H) f32   initial decoder hidden state
      watt_t_ref : (H, H)    bf16  attention weight, pre-transposed
      wih0_e_ref : (E, 3H)   bf16  layer-0 input weight, embedding chunk
      wih0_c_ref : (H, 3H)   bf16  layer-0 input weight, context chunk
      rest: [wih_rest (L-1,H,3H) bf16]  (only if L > 1)
            whh (L,H,3H) bf16, bias (L,4,H) f32  [b_r, b_z, b_in, b_hn],
            wout_h (H,V) bf16, wout_c (H,V) bf16, bout (1,V) f32
    Outputs: logits (1,B,V) f32, hout (L,B,H) f32, mask (1,B,S) f32
    Scratch: h_scr (L,B,H) f32 — hidden-state carry across grid steps.
    """
    H = hidden_dim
    L = n_layers
    f32 = _ACC_DTYPE
    cdt = _COMPUTE_DTYPE

    rest = list(rest)
    wih_rest_ref = rest.pop(0) if L > 1 else None
    (whh_ref, bias_ref, wout_h_ref, wout_c_ref, bout_ref,
     logits_ref, hout_ref, mask_ref, h_scr) = rest

    t = pl.program_id(0)

    @pl.when(t == 0)
    def _():
        h_scr[...] = h0_ref[...]

    emb = emb_ref[0]                           # (B, E) bf16
    enc = enc_ref[...]                         # (B, S, H) bf16
    h_last = h_scr[L - 1]                      # (B, H) f32

    # ---- Luong "general" attention:  energies = enc . (h_last @ W^T) -----
    hw = jnp.dot(h_last.astype(cdt), watt_t_ref[...],
                 preferred_element_type=f32)                   # (B, H) f32
    # TODO(synk): at production S,H these two reductions should be batched
    # MXU dot_generals; at toy shapes the fused VPU/XLU path is cheaper.
    energies = jnp.sum(enc * hw[:, None, :], axis=-1)          # (B, S) f32
    m = jnp.max(energies, axis=-1, keepdims=True)
    e = jnp.exp(energies - m)
    attn = e / jnp.sum(e, axis=-1, keepdims=True)              # exact softmax
    mask_ref[0] = attn
    context = jnp.sum(attn[:, :, None] * enc, axis=1)          # (B, H) f32
    ctx = context.astype(cdt)

    # ---- multi-layer GRU cell, single time step (fused 3H gate matmuls) --
    x = None
    for l in range(L):
        if l == 0:
            gi = (jnp.dot(emb, wih0_e_ref[...], preferred_element_type=f32)
                  + jnp.dot(ctx, wih0_c_ref[...], preferred_element_type=f32))
        else:
            gi = jnp.dot(x, wih_rest_ref[l - 1], preferred_element_type=f32)
        h_prev = h_scr[l]                                      # (B, H) f32
        gh = jnp.dot(h_prev.astype(cdt), whh_ref[l],
                     preferred_element_type=f32)               # (B, 3H) f32
        b = bias_ref[l]                                        # (4, H) f32
        r = jax.nn.sigmoid(gi[:, :H] + gh[:, :H] + b[0:1])
        z = jax.nn.sigmoid(gi[:, H:2 * H] + gh[:, H:2 * H] + b[1:2])
        n = jnp.tanh(gi[:, 2 * H:] + b[2:3] + r * (gh[:, 2 * H:] + b[3:4]))
        h_new = (1.0 - z) * n + z * h_prev                     # f32
        h_scr[l] = h_new
        x = h_new.astype(cdt)
        # TODO(synk): training-mode inter-layer GRU dropout not implemented.

    # ---- output projection (woutT pre-split: no lane-axis concat) --------
    logits_ref[0] = (jnp.dot(x, wout_h_ref[...], preferred_element_type=f32)
                     + jnp.dot(ctx, wout_c_ref[...], preferred_element_type=f32)
                     + bout_ref[...])

    hout_ref[...] = h_scr[...]


# ----------------------------------------------------------------------------
# One-time (per-model / per-sequence) preparation — outside the decode loop
# ----------------------------------------------------------------------------
def prepare_kernel_params(params, *, n_layers, embed_dim, hidden_dim):
    """Pack / pre-split / pre-transpose / bf16-cast PyTorch-layout params."""
    E, H = embed_dim, hidden_dim
    cdt, f32 = _COMPUTE_DTYPE, _ACC_DTYPE
    kp = {}
    kp["embed"] = params["embed"].astype(cdt)                 # (V, E)
    kp["watt_t"] = params["watt"].T.astype(cdt)               # (H, H)

    wih0 = params["wihT0"]                                    # (E+H, 3H)
    kp["wih0_e"] = wih0[:E].astype(cdt)                       # (E, 3H)
    kp["wih0_c"] = wih0[E:].astype(cdt)                       # (H, 3H)
    if n_layers > 1:
        kp["wih_rest"] = jnp.stack(
            [params[f"wihT{l}"] for l in range(1, n_layers)]).astype(cdt)
    kp["whh"] = jnp.stack(
        [params[f"whhT{l}"] for l in range(n_layers)]).astype(cdt)

    biases = []
    for l in range(n_layers):
        bih, bhh = params[f"bih{l}"], params[f"bhh{l}"]
        biases.append(jnp.concatenate(
            [bih[:, :H] + bhh[:, :H],            # b_r  (outside nonlinearity)
             bih[:, H:2 * H] + bhh[:, H:2 * H],  # b_z
             bih[:, 2 * H:],                     # b_in
             bhh[:, 2 * H:]], axis=0))           # b_hn (inside r * (...))
    kp["bias"] = jnp.stack(biases).astype(f32)                # (L, 4, H)

    kp["wout_h"] = params["woutT"][:H].astype(cdt)            # (H, V)
    kp["wout_c"] = params["woutT"][H:].astype(cdt)            # (H, V)
    kp["bout"] = params["bout"].astype(f32)                   # (1, V)
    return kp


def prepare_encoder_out(encoder_out):
    """(S,B,H) f32 seq-first -> (B,S,H) bf16 batch-major, once per sequence."""
    return jnp.transpose(encoder_out, (1, 0, 2)).astype(_COMPUTE_DTYPE)


# ----------------------------------------------------------------------------
# Fused T-step decode wrapper (T=1 == the module's single-frame forward)
# ----------------------------------------------------------------------------
def decoder_forward(tokens, enc_bm, decoder_hidden, kparams,
                    *, n_layers, hidden_dim):
    """tokens (T,B) int32 (teacher-forced), enc_bm (B,S,H) bf16,
    decoder_hidden (L,B,H) f32.
    Returns (logits (T,B,V), final hidden (L,B,H), attention masks (T,B,S)).
    """
    T, B = tokens.shape
    _, S, H = enc_bm.shape
    L = n_layers
    E = kparams["wih0_e"].shape[0]
    V = kparams["bout"].shape[-1]

    # Glue (outside the per-step path): embedding gather for all T steps.
    emb_steps = jnp.take(kparams["embed"], tokens, axis=0)     # (T, B, E) bf16

    step3 = lambda t: (t, 0, 0)
    c2 = lambda t: (0, 0)
    c3 = lambda t: (0, 0, 0)

    inputs = [emb_steps, enc_bm, decoder_hidden, kparams["watt_t"],
              kparams["wih0_e"], kparams["wih0_c"]]
    in_specs = [
        pl.BlockSpec((1, B, E), step3),           # per-step embedding rows
        pl.BlockSpec((B, S, H), c3),              # resident across steps
        pl.BlockSpec((L, B, H), c3),
        pl.BlockSpec((H, H), c2),
        pl.BlockSpec((E, 3 * H), c2),
        pl.BlockSpec((H, 3 * H), c2),
    ]
    if L > 1:
        inputs.append(kparams["wih_rest"])
        in_specs.append(pl.BlockSpec((L - 1, H, 3 * H), c3))
    inputs += [kparams["whh"], kparams["bias"],
               kparams["wout_h"], kparams["wout_c"], kparams["bout"]]
    in_specs += [
        pl.BlockSpec((L, H, 3 * H), c3),
        pl.BlockSpec((L, 4, H), c3),
        pl.BlockSpec((H, V), c2),
        pl.BlockSpec((H, V), c2),
        pl.BlockSpec((1, V), c2),
    ]

    out_shape = (jax.ShapeDtypeStruct((T, B, V), jnp.float32),
                 jax.ShapeDtypeStruct((L, B, H), jnp.float32),
                 jax.ShapeDtypeStruct((T, B, S), jnp.float32))
    out_specs = (pl.BlockSpec((1, B, V), step3),
                 pl.BlockSpec((L, B, H), c3),
                 pl.BlockSpec((1, B, S), step3))

    grid_spec = pltpu.PrefetchScalarGridSpec(
        num_scalar_prefetch=0,
        grid=(T,),
        in_specs=in_specs,
        out_specs=out_specs,
        scratch_shapes=[pltpu.VMEM((L, B, H), jnp.float32)],   # hidden carry
    )

    logits, hout, mask = pl.pallas_call(
        functools.partial(_decoder_kernel, L, H),
        out_shape=out_shape,
        grid_spec=grid_spec,
        compiler_params=pltpu.CompilerParams(
            dimension_semantics=("arbitrary",),     # sequential carry over t
            vmem_limit_bytes=32 * 1024 * 1024,      # > v5e's 16 MiB default
        ),
    )(*inputs)
    return logits, hout, mask


# ----------------------------------------------------------------------------
# Pure-JAX reference (PyTorch layout/math, same bf16/f32 dtype policy)
# ----------------------------------------------------------------------------
def decoder_forward_ref(tokens, encoder_out, decoder_hidden, params,
                        *, n_layers, hidden_dim):
    T = tokens.shape[0]
    H = hidden_dim
    cdt, f32 = _COMPUTE_DTYPE, _ACC_DTYPE
    emb_tab = params["embed"].astype(cdt)
    enc = jnp.transpose(encoder_out, (1, 0, 2)).astype(cdt)   # (B, S, H)
    watt = params["watt"].astype(cdt)
    hidden = decoder_hidden
    logits_steps, mask_steps = [], []
    for t in range(T):
        emb = jnp.take(emb_tab, tokens[t], axis=0)            # (B, E)
        h_last = hidden[-1]
        enc_w = jnp.einsum("bsh,hk->bsk", enc, watt, preferred_element_type=f32)
        energies = jnp.einsum("bsk,bk->bs", enc_w, h_last.astype(f32))
        attn = jax.nn.softmax(energies, axis=-1)
        context = jnp.einsum("bs,bsh->bh", attn, enc.astype(f32))
        x = jnp.concatenate([emb.astype(f32), context], axis=1)
        new_hidden = []
        for l in range(n_layers):
            h_prev = hidden[l]
            gi = jnp.dot(x.astype(cdt), params[f"wihT{l}"].astype(cdt),
                         preferred_element_type=f32) + params[f"bih{l}"]
            gh = jnp.dot(h_prev.astype(cdt), params[f"whhT{l}"].astype(cdt),
                         preferred_element_type=f32) + params[f"bhh{l}"]
            r = jax.nn.sigmoid(gi[:, :H] + gh[:, :H])
            z = jax.nn.sigmoid(gi[:, H:2 * H] + gh[:, H:2 * H])
            n = jnp.tanh(gi[:, 2 * H:] + r * gh[:, 2 * H:])
            h_new = (1.0 - z) * n + z * h_prev
            new_hidden.append(h_new)
            x = h_new
        hidden = jnp.stack(new_hidden, axis=0)
        cat = jnp.concatenate([x, context], axis=1)
        logits = jnp.dot(cat.astype(cdt), params["woutT"].astype(cdt),
                         preferred_element_type=f32) + params["bout"]
        logits_steps.append(logits)
        mask_steps.append(attn)
    return jnp.stack(logits_steps), hidden, jnp.stack(mask_steps)


# ----------------------------------------------------------------------------
# Deterministic parameter construction (PyTorch-default-style shapes)
# ----------------------------------------------------------------------------
def init_params(key, vocab, embed_dim, hidden_dim, n_layers, pad_idx=0):
    keys = iter(jax.random.split(key, 8 + 4 * n_layers))
    H, E = hidden_dim, embed_dim
    params = {}

    emb = jax.random.normal(next(keys), (vocab, E), jnp.float32)
    emb = emb.at[pad_idx].set(0.0)                     # padding_idx row zeroed
    params["embed"] = emb

    k_att = 1.0 / jnp.sqrt(H)
    params["watt"] = jax.random.uniform(next(keys), (H, H), jnp.float32,
                                        -k_att, k_att)

    k_gru = 1.0 / jnp.sqrt(H)
    for l in range(n_layers):
        in_l = (E + H) if l == 0 else H
        params[f"wihT{l}"] = jax.random.uniform(next(keys), (in_l, 3 * H),
                                                jnp.float32, -k_gru, k_gru)
        params[f"whhT{l}"] = jax.random.uniform(next(keys), (H, 3 * H),
                                                jnp.float32, -k_gru, k_gru)
        params[f"bih{l}"] = jax.random.uniform(next(keys), (1, 3 * H),
                                               jnp.float32, -k_gru, k_gru)
        params[f"bhh{l}"] = jax.random.uniform(next(keys), (1, 3 * H),
                                               jnp.float32, -k_gru, k_gru)

    k_out = 1.0 / jnp.sqrt(2 * H)
    params["woutT"] = jax.random.uniform(next(keys), (2 * H, vocab),
                                         jnp.float32, -k_out, k_out)
    params["bout"] = jax.random.uniform(next(keys), (1, vocab),
                                        jnp.float32, -k_out, k_out)
    return params


if __name__ == "__main__":
    # Small, module-consistent shapes (lane-dense vocab, sublane-filling B).
    V, E, H, L = 128, 32, 32, 2     # target_vocab_size, embed_dim, hidden_dim, n_layers
    B, S, T = 8, 16, 4              # batch, source seq length, decode steps
    PAD_IDX = 0

    key = jax.random.PRNGKey(0)
    k_p, k_tok, k_enc, k_h = jax.random.split(key, 4)

    params = init_params(k_p, V, E, H, L, pad_idx=PAD_IDX)
    tokens = jax.random.randint(k_tok, (T, B), 0, V, dtype=jnp.int32)
    encoder_out = jax.random.normal(k_enc, (S, B, H), jnp.float32)
    decoder_hidden = jax.random.normal(k_h, (L, B, H), jnp.float32)

    # One-time prep (hoisted out of the decode loop).
    kparams = prepare_kernel_params(params, n_layers=L, embed_dim=E, hidden_dim=H)
    enc_bm = prepare_encoder_out(encoder_out)           # (B, S, H) bf16

    fwd = jax.jit(functools.partial(decoder_forward, n_layers=L, hidden_dim=H))
    logits, h_new, mask = fwd(tokens, enc_bm, decoder_hidden, kparams)
    jax.block_until_ready((logits, h_new, mask))

    # Correctness check against a pure-JAX reference (same bf16/f32 policy).
    r_logits, r_h, r_mask = decoder_forward_ref(
        tokens, encoder_out, decoder_hidden, params, n_layers=L, hidden_dim=H)
    assert logits.shape == (T, B, V) and h_new.shape == (L, B, H) and mask.shape == (T, B, S)
    assert jnp.allclose(logits, r_logits, rtol=5e-2, atol=5e-2), \
        float(jnp.max(jnp.abs(logits - r_logits)))
    assert jnp.allclose(h_new, r_h, rtol=5e-2, atol=5e-2), \
        float(jnp.max(jnp.abs(h_new - r_h)))
    assert jnp.allclose(mask, r_mask, rtol=5e-2, atol=5e-2), \
        float(jnp.max(jnp.abs(mask - r_mask)))

    print("KERNEL_OK")
</pallas_src>

<mosaic_0001>
module attributes {stable_mosaic.version = 11 : i64} {
  func.func @_decoder_kernel(%arg0: i32, %arg1: memref<1x8x32xbf16, #tpu.memory_space<vmem>>, %arg2: memref<8x16x32xbf16, #tpu.memory_space<vmem>>, %arg3: memref<2x8x32xf32, #tpu.memory_space<vmem>>, %arg4: memref<32x32xbf16, #tpu.memory_space<vmem>>, %arg5: memref<32x96xbf16, #tpu.memory_space<vmem>>, %arg6: memref<32x96xbf16, #tpu.memory_space<vmem>>, %arg7: memref<1x32x96xbf16, #tpu.memory_space<vmem>>, %arg8: memref<2x32x96xbf16, #tpu.memory_space<vmem>>, %arg9: memref<2x4x32xf32, #tpu.memory_space<vmem>>, %arg10: memref<32x128xbf16, #tpu.memory_space<vmem>>, %arg11: memref<32x128xbf16, #tpu.memory_space<vmem>>, %arg12: memref<1x128xf32, #tpu.memory_space<vmem>>, %arg13: memref<1x8x128xf32, #tpu.memory_space<vmem>>, %arg14: memref<2x8x32xf32, #tpu.memory_space<vmem>>, %arg15: memref<1x8x16xf32, #tpu.memory_space<vmem>>, %arg16: memref<2x8x32xf32, #tpu.memory_space<vmem>>) attributes {dimension_semantics = [#tpu.dimension_semantics<arbitrary>], iteration_bounds = array<i64: 4>, scalar_prefetch = 0 : i64, scratch_operands = 1 : i64, tpu.core_type = #tpu.core_type<tc>, window_params = [{transform_indices = @transform_0, window_bounds = array<i64: 1, 8, 32>}, {pipeline_mode = #tpu.pipeline_mode<synchronous>, transform_indices = @transform_1, window_bounds = array<i64: 8, 16, 32>}, {pipeline_mode = #tpu.pipeline_mode<synchronous>, transform_indices = @transform_2, window_bounds = array<i64: 2, 8, 32>}, {pipeline_mode = #tpu.pipeline_mode<synchronous>, transform_indices = @transform_3, window_bounds = array<i64: 32, 32>}, {pipeline_mode = #tpu.pipeline_mode<synchronous>, transform_indices = @transform_4, window_bounds = array<i64: 32, 96>}, {pipeline_mode = #tpu.pipeline_mode<synchronous>, transform_indices = @transform_5, window_bounds = array<i64: 32, 96>}, {pipeline_mode = #tpu.pipeline_mode<synchronous>, transform_indices = @transform_6, window_bounds = array<i64: 1, 32, 96>}, {pipeline_mode = #tpu.pipeline_mode<synchronous>, transform_indices = @transform_7, window_bounds = array<i64: 2, 32, 96>}, {pipeline_mode = #tpu.pipeline_mode<synchronous>, transform_indices = @transform_8, window_bounds = array<i64: 2, 4, 32>}, {pipeline_mode = #tpu.pipeline_mode<synchronous>, transform_indices = @transform_9, window_bounds = array<i64: 32, 128>}, {pipeline_mode = #tpu.pipeline_mode<synchronous>, transform_indices = @transform_10, window_bounds = array<i64: 32, 128>}, {pipeline_mode = #tpu.pipeline_mode<synchronous>, transform_indices = @transform_11, window_bounds = array<i64: 1, 128>}, {transform_indices = @transform_12, window_bounds = array<i64: 1, 8, 128>}, {pipeline_mode = #tpu.pipeline_mode<synchronous>, transform_indices = @transform_13, window_bounds = array<i64: 2, 8, 32>}, {transform_indices = @transform_14, window_bounds = array<i64: 1, 8, 16>}]} {
    %c0_i32 = arith.constant 0 : i32
    %0 = arith.cmpi eq, %arg0, %c0_i32 : i32
    %1 = arith.extui %0 : i1 to i32
    %c0_i32_0 = arith.constant 0 : i32
    %2 = arith.cmpi ne, %1, %c0_i32_0 : i32
    scf.if %2 {
      %c0_76 = arith.constant 0 : index
      %c0_77 = arith.constant 0 : index
      %c0_78 = arith.constant 0 : index
      %155 = vector.load %arg3[%c0_76, %c0_77, %c0_78] : memref<2x8x32xf32, #tpu.memory_space<vmem>>, vector<2x8x32xf32>
      %c0_79 = arith.constant 0 : index
      %c0_80 = arith.constant 0 : index
      %c0_81 = arith.constant 0 : index
      %156 = vector.load %arg16[%c0_79, %c0_80, %c0_81] : memref<2x8x32xf32, #tpu.memory_space<vmem>>, vector<2x8x32xf32>
      tpu.vector_store %arg16[%c0_79, %c0_80, %c0_81], %155 {strides = array<i32>} : memref<2x8x32xf32, #tpu.memory_space<vmem>>, vector<2x8x32xf32>,
    } else {
    }
    %c0 = arith.constant 0 : index
    %c0_1 = arith.constant 0 : index
    %c0_2 = arith.constant 0 : index
    %3 = vector.load %arg1[%c0, %c0_1, %c0_2] : memref<1x8x32xbf16, #tpu.memory_space<vmem>>, vector<1x8x32xbf16>
    %4 = vector.shape_cast %3 : vector<1x8x32xbf16> to vector<8x32xbf16>
    %c0_3 = arith.constant 0 : index
    %c0_4 = arith.constant 0 : index
    %c0_5 = arith.constant 0 : index
    %5 = vector.load %arg2[%c0_3, %c0_4, %c0_5] : memref<8x16x32xbf16, #tpu.memory_space<vmem>>, vector<8x16x32xbf16>
    %c1 = arith.constant 1 : index
    %c0_6 = arith.constant 0 : index
    %c0_7 = arith.constant 0 : index
    %6 = vector.load %arg16[%c1, %c0_6, %c0_7] : memref<2x8x32xf32, #tpu.memory_space<vmem>>, vector<1x8x32xf32>
    %7 = vector.shape_cast %6 : vector<1x8x32xf32> to vector<8x32xf32>
    %8 = arith.truncf %7 : vector<8x32xf32> to vector<8x32xbf16>
    %c0_8 = arith.constant 0 : index
    %c0_9 = arith.constant 0 : index
    %9 = vector.load %arg4[%c0_8, %c0_9] : memref<32x32xbf16, #tpu.memory_space<vmem>>, vector<32x32xbf16>
    %cst = arith.constant dense<0.000000e+00> : vector<8x32xf32>
    %10 = tpu.matmul %8, %9, %cst {dimension_numbers = #tpu.dot_dimension_numbers<[1], [0], [0], [1], [0, 0, 1, 1], [], []>} : vector<8x32xbf16>, vector<32x32xbf16>, vector<8x32xf32> -> vector<8x32xf32>
    %11 = vector.shape_cast %10 : vector<8x32xf32> to vector<8x1x32xf32>
    %12 = arith.extf %5 : vector<8x16x32xbf16> to vector<8x16x32xf32>
    %13 = vector.broadcast %11 : vector<8x1x32xf32> to vector<8x16x32xf32>
    %14 = arith.mulf %12, %13 : vector<8x16x32xf32>
    %cst_10 = arith.constant dense<0.000000e+00> : vector<8x16xf32>
    %15 = vector.multi_reduction <add>, %14, %cst_10 [2] : vector<8x16x32xf32> to vector<8x16xf32>
    %cst_11 = arith.constant dense<0xFF800000> : vector<8xf32>
    %16 = vector.multi_reduction <maximumf>, %15, %cst_11 [1] : vector<8x16xf32> to vector<8xf32>
    %17 = vector.shape_cast %16 : vector<8xf32> to vector<8x1xf32>
    %18 = vector.broadcast %17 : vector<8x1xf32> to vector<8x16xf32>
    %19 = arith.subf %15, %18 : vector<8x16xf32>
    %20 = math.exp %19 : vector<8x16xf32>
    %cst_12 = arith.constant dense<0.000000e+00> : vector<8xf32>
    %21 = vector.multi_reduction <add>, %20, %cst_12 [1] : vector<8x16xf32> to vector<8xf32>
    %22 = vector.shape_cast %21 : vector<8xf32> to vector<8x1xf32>
    %23 = vector.broadcast %22 : vector<8x1xf32> to vector<8x16xf32>
    %24 = arith.divf %20, %23 : vector<8x16xf32>
    %c0_13 = arith.constant 0 : index
    %c0_14 = arith.constant 0 : index
    %c0_15 = arith.constant 0 : index
    %25 = vector.load %arg15[%c0_13, %c0_14, %c0_15] : memref<1x8x16xf32, #tpu.memory_space<vmem>>, vector<1x8x16xf32>
    %26 = vector.shape_cast %25 : vector<1x8x16xf32> to vector<8x16xf32>
    %27 = vector.shape_cast %24 : vector<8x16xf32> to vector<1x8x16xf32>
    tpu.vector_store %arg15[%c0_13, %c0_14, %c0_15], %27 {strides = array<i32>} : memref<1x8x16xf32, #tpu.memory_space<vmem>>, vector<1x8x16xf32>,
    %28 = vector.shape_cast %24 : vector<8x16xf32> to vector<8x16x1xf32>
    %29 = arith.extf %5 : vector<8x16x32xbf16> to vector<8x16x32xf32>
    %30 = vector.broadcast %28 : vector<8x16x1xf32> to vector<8x16x32xf32>
    %31 = arith.mulf %30, %29 : vector<8x16x32xf32>
    %cst_16 = arith.constant dense<0.000000e+00> : vector<8x32xf32>
    %32 = vector.multi_reduction <add>, %31, %cst_16 [1] : vector<8x16x32xf32> to vector<8x32xf32>
    %33 = arith.truncf %32 : vector<8x32xf32> to vector<8x32xbf16>
    %c0_17 = arith.constant 0 : index
    %c0_18 = arith.constant 0 : index
    %34 = vector.load %arg5[%c0_17, %c0_18] : memref<32x96xbf16, #tpu.memory_space<vmem>>, vector<32x96xbf16>
    %cst_19 = arith.constant dense<0.000000e+00> : vector<8x96xf32>
    %35 = tpu.matmul %4, %34, %cst_19 {dimension_numbers = #tpu.dot_dimension_numbers<[1], [0], [0], [1], [0, 0, 1, 1], [], []>} : vector<8x32xbf16>, vector<32x96xbf16>, vector<8x96xf32> -> vector<8x96xf32>
    %c0_20 = arith.constant 0 : index
    %c0_21 = arith.constant 0 : index
    %36 = vector.load %arg6[%c0_20, %c0_21] : memref<32x96xbf16, #tpu.memory_space<vmem>>, vector<32x96xbf16>
    %cst_22 = arith.constant dense<0.000000e+00> : vector<8x96xf32>
    %37 = tpu.matmul %33, %36, %cst_22 {dimension_numbers = #tpu.dot_dimension_numbers<[1], [0], [0], [1], [0, 0, 1, 1], [], []>} : vector<8x32xbf16>, vector<32x96xbf16>, vector<8x96xf32> -> vector<8x96xf32>
    %38 = arith.addf %35, %37 : vector<8x96xf32>
    %c0_23 = arith.constant 0 : index
    %c0_24 = arith.constant 0 : index
    %c0_25 = arith.constant 0 : index
    %39 = vector.load %arg16[%c0_23, %c0_24, %c0_25] : memref<2x8x32xf32, #tpu.memory_space<vmem>>, vector<1x8x32xf32>
    %40 = vector.shape_cast %39 : vector<1x8x32xf32> to vector<8x32xf32>
    %41 = arith.truncf %40 : vector<8x32xf32> to vector<8x32xbf16>
    %c0_26 = arith.constant 0 : index
    %c0_27 = arith.constant 0 : index
    %c0_28 = arith.constant 0 : index
    %42 = vector.load %arg8[%c0_26, %c0_27, %c0_28] : memref<2x32x96xbf16, #tpu.memory_space<vmem>>, vector<1x32x96xbf16>
    %43 = vector.shape_cast %42 : vector<1x32x96xbf16> to vector<32x96xbf16>
    %cst_29 = arith.constant dense<0.000000e+00> : vector<8x96xf32>
    %44 = tpu.matmul %41, %43, %cst_29 {dimension_numbers = #tpu.dot_dimension_numbers<[1], [0], [0], [1], [0, 0, 1, 1], [], []>} : vector<8x32xbf16>, vector<32x96xbf16>, vector<8x96xf32> -> vector<8x96xf32>
    %c0_30 = arith.constant 0 : index
    %c0_31 = arith.constant 0 : index
    %c0_32 = arith.constant 0 : index
    %45 = vector.load %arg9[%c0_30, %c0_31, %c0_32] : memref<2x4x32xf32, #tpu.memory_space<vmem>>, vector<1x4x32xf32>
    %46 = vector.shape_cast %45 : vector<1x4x32xf32> to vector<4x32xf32>
    %47 = vector.extract_strided_slice %38 {offsets = [0, 0], sizes = [8, 32], strides = [1, 1]} : vector<8x96xf32> to vector<8x32xf32>
    %48 = vector.extract_strided_slice %44 {offsets = [0, 0], sizes = [8, 32], strides = [1, 1]} : vector<8x96xf32> to vector<8x32xf32>
    %49 = arith.addf %47, %48 : vector<8x32xf32>
    %50 = vector.extract_strided_slice %46 {offsets = [0, 0], sizes = [1, 32], strides = [1, 1]} : vector<4x32xf32> to vector<1x32xf32>
    %51 = vector.broadcast %50 : vector<1x32xf32> to vector<8x32xf32>
    %52 = arith.addf %49, %51 : vector<8x32xf32>
    %53 = arith.negf %52 : vector<8x32xf32>
    %54 = math.exp %53 : vector<8x32xf32>
    %cst_33 = arith.constant 1.000000e+00 : f32
    %55 = vector.broadcast %cst_33 : f32 to vector<8x32xf32>
    %56 = arith.addf %55, %54 : vector<8x32xf32>
    %57 = arith.divf %55, %56 : vector<8x32xf32>
    %58 = vector.extract_strided_slice %38 {offsets = [0, 32], sizes = [8, 32], strides = [1, 1]} : vector<8x96xf32> to vector<8x32xf32>
    %59 = vector.extract_strided_slice %44 {offsets = [0, 32], sizes = [8, 32], strides = [1, 1]} : vector<8x96xf32> to vector<8x32xf32>
    %60 = arith.addf %58, %59 : vector<8x32xf32>
    %61 = vector.extract_strided_slice %46 {offsets = [1, 0], sizes = [1, 32], strides = [1, 1]} : vector<4x32xf32> to vector<1x32xf32>
    %62 = vector.broadcast %61 : vector<1x32xf32> to vector<8x32xf32>
    %63 = arith.addf %60, %62 : vector<8x32xf32>
    %64 = arith.negf %63 : vector<8x32xf32>
    %65 = math.exp %64 : vector<8x32xf32>
    %cst_34 = arith.constant 1.000000e+00 : f32
    %66 = vector.broadcast %cst_34 : f32 to vector<8x32xf32>
    %67 = arith.addf %66, %65 : vector<8x32xf32>
    %68 = arith.divf %66, %67 : vector<8x32xf32>
    %69 = vector.extract_strided_slice %38 {offsets = [0, 64], sizes = [8, 32], strides = [1, 1]} : vector<8x96xf32> to vector<8x32xf32>
    %70 = vector.extract_strided_slice %46 {offsets = [2, 0], sizes = [1, 32], strides = [1, 1]} : vector<4x32xf32> to vector<1x32xf32>
    %71 = vector.broadcast %70 : vector<1x32xf32> to vector<8x32xf32>
    %72 = arith.addf %69, %71 : vector<8x32xf32>
    %73 = vector.extract_strided_slice %44 {offsets = [0, 64], sizes = [8, 32], strides = [1, 1]} : vector<8x96xf32> to vector<8x32xf32>
    %74 = vector.extract_strided_slice %46 {offsets = [3, 0], sizes = [1, 32], strides = [1, 1]} : vector<4x32xf32> to vector<1x32xf32>
    %75 = vector.broadcast %74 : vector<1x32xf32> to vector<8x32xf32>
    %76 = arith.addf %73, %75 : vector<8x32xf32>
    %77 = arith.mulf %57, %76 : vector<8x32xf32>
    %78 = arith.addf %72, %77 : vector<8x32xf32>
    %79 = math.tanh %78 : vector<8x32xf32>
    %cst_35 = arith.constant 1.000000e+00 : f32
    %80 = vector.broadcast %cst_35 : f32 to vector<8x32xf32>
    %81 = arith.subf %80, %68 : vector<8x32xf32>
    %82 = arith.mulf %81, %79 : vector<8x32xf32>
    %83 = arith.mulf %68, %40 : vector<8x32xf32>
    %84 = arith.addf %82, %83 : vector<8x32xf32>
    %c0_36 = arith.constant 0 : index
    %c0_37 = arith.constant 0 : index
    %c0_38 = arith.constant 0 : index
    %85 = vector.load %arg16[%c0_36, %c0_37, %c0_38] : memref<2x8x32xf32, #tpu.memory_space<vmem>>, vector<1x8x32xf32>
    %86 = vector.shape_cast %85 : vector<1x8x32xf32> to vector<8x32xf32>
    %87 = vector.shape_cast %84 : vector<8x32xf32> to vector<1x8x32xf32>
    tpu.vector_store %arg16[%c0_36, %c0_37, %c0_38], %87 {strides = array<i32>} : memref<2x8x32xf32, #tpu.memory_space<vmem>>, vector<1x8x32xf32>,
    %88 = arith.truncf %84 : vector<8x32xf32> to vector<8x32xbf16>
    %c0_39 = arith.constant 0 : index
    %c0_40 = arith.constant 0 : index
    %c0_41 = arith.constant 0 : index
    %89 = vector.load %arg7[%c0_39, %c0_40, %c0_41] : memref<1x32x96xbf16, #tpu.memory_space<vmem>>, vector<1x32x96xbf16>
    %90 = vector.shape_cast %89 : vector<1x32x96xbf16> to vector<32x96xbf16>
    %cst_42 = arith.constant dense<0.000000e+00> : vector<8x96xf32>
    %91 = tpu.matmul %88, %90, %cst_42 {dimension_numbers = #tpu.dot_dimension_numbers<[1], [0], [0], [1], [0, 0, 1, 1], [], []>} : vector<8x32xbf16>, vector<32x96xbf16>, vector<8x96xf32> -> vector<8x96xf32>
    %c1_43 = arith.constant 1 : index
    %c0_44 = arith.constant 0 : index
    %c0_45 = arith.constant 0 : index
    %92 = vector.load %arg16[%c1_43, %c0_44, %c0_45] : memref<2x8x32xf32, #tpu.memory_space<vmem>>, vector<1x8x32xf32>
    %93 = vector.shape_cast %92 : vector<1x8x32xf32> to vector<8x32xf32>
    %94 = arith.truncf %93 : vector<8x32xf32> to vector<8x32xbf16>
    %c1_46 = arith.constant 1 : index
    %c0_47 = arith.constant 0 : index
    %c0_48 = arith.constant 0 : index
    %95 = vector.load %arg8[%c1_46, %c0_47, %c0_48] : memref<2x32x96xbf16, #tpu.memory_space<vmem>>, vector<1x32x96xbf16>
    %96 = vector.shape_cast %95 : vector<1x32x96xbf16> to vector<32x96xbf16>
    %cst_49 = arith.constant dense<0.000000e+00> : vector<8x96xf32>
    %97 = tpu.matmul %94, %96, %cst_49 {dimension_numbers = #tpu.dot_dimension_numbers<[1], [0], [0], [1], [0, 0, 1, 1], [], []>} : vector<8x32xbf16>, vector<32x96xbf16>, vector<8x96xf32> -> vector<8x96xf32>
    %c1_50 = arith.constant 1 : index
    %c0_51 = arith.constant 0 : index
    %c0_52 = arith.constant 0 : index
    %98 = vector.load %arg9[%c1_50, %c0_51, %c0_52] : memref<2x4x32xf32, #tpu.memory_space<vmem>>, vector<1x4x32xf32>
    %99 = vector.shape_cast %98 : vector<1x4x32xf32> to vector<4x32xf32>
    %100 = vector.extract_strided_slice %91 {offsets = [0, 0], sizes = [8, 32], strides = [1, 1]} : vector<8x96xf32> to vector<8x32xf32>
    %101 = vector.extract_strided_slice %97 {offsets = [0, 0], sizes = [8, 32], strides = [1, 1]} : vector<8x96xf32> to vector<8x32xf32>
    %102 = arith.addf %100, %101 : vector<8x32xf32>
    %103 = vector.extract_strided_slice %99 {offsets = [0, 0], sizes = [1, 32], strides = [1, 1]} : vector<4x32xf32> to vector<1x32xf32>
    %104 = vector.broadcast %103 : vector<1x32xf32> to vector<8x32xf32>
    %105 = arith.addf %102, %104 : vector<8x32xf32>
    %106 = arith.negf %105 : vector<8x32xf32>
    %107 = math.exp %106 : vector<8x32xf32>
    %cst_53 = arith.constant 1.000000e+00 : f32
    %108 = vector.broadcast %cst_53 : f32 to vector<8x32xf32>
    %109 = arith.addf %108, %107 : vector<8x32xf32>
    %110 = arith.divf %108, %109 : vector<8x32xf32>
    %111 = vector.extract_strided_slice %91 {offsets = [0, 32], sizes = [8, 32], strides = [1, 1]} : vector<8x96xf32> to vector<8x32xf32>
    %112 = vector.extract_strided_slice %97 {offsets = [0, 32], sizes = [8, 32], strides = [1, 1]} : vector<8x96xf32> to vector<8x32xf32>
    %113 = arith.addf %111, %112 : vector<8x32xf32>
    %114 = vector.extract_strided_slice %99 {offsets = [1, 0], sizes = [1, 32], strides = [1, 1]} : vector<4x32xf32> to vector<1x32xf32>
    %115 = vector.broadcast %114 : vector<1x32xf32> to vector<8x32xf32>
    %116 = arith.addf %113, %115 : vector<8x32xf32>
    %117 = arith.negf %116 : vector<8x32xf32>
    %118 = math.exp %117 : vector<8x32xf32>
    %cst_54 = arith.constant 1.000000e+00 : f32
    %119 = vector.broadcast %cst_54 : f32 to vector<8x32xf32>
    %120 = arith.addf %119, %118 : vector<8x32xf32>
    %121 = arith.divf %119, %120 : vector<8x32xf32>
    %122 = vector.extract_strided_slice %91 {offsets = [0, 64], sizes = [8, 32], strides = [1, 1]} : vector<8x96xf32> to vector<8x32xf32>
    %123 = vector.extract_strided_slice %99 {offsets = [2, 0], sizes = [1, 32], strides = [1, 1]} : vector<4x32xf32> to vector<1x32xf32>
    %124 = vector.broadcast %123 : vector<1x32xf32> to vector<8x32xf32>
    %125 = arith.addf %122, %124 : vector<8x32xf32>
    %126 = vector.extract_strided_slice %97 {offsets = [0, 64], sizes = [8, 32], strides = [1, 1]} : vector<8x96xf32> to vector<8x32xf32>
    %127 = vector.extract_strided_slice %99 {offsets = [3, 0], sizes = [1, 32], strides = [1, 1]} : vector<4x32xf32> to vector<1x32xf32>
    %128 = vector.broadcast %127 : vector<1x32xf32> to vector<8x32xf32>
    %129 = arith.addf %126, %128 : vector<8x32xf32>
    %130 = arith.mulf %110, %129 : vector<8x32xf32>
    %131 = arith.addf %125, %130 : vector<8x32xf32>
    %132 = math.tanh %131 : vector<8x32xf32>
    %cst_55 = arith.constant 1.000000e+00 : f32
    %133 = vector.broadcast %cst_55 : f32 to vector<8x32xf32>
    %134 = arith.subf %133, %121 : vector<8x32xf32>
    %135 = arith.mulf %134, %132 : vector<8x32xf32>
    %136 = arith.mulf %121, %93 : vector<8x32xf32>
    %137 = arith.addf %135, %136 : vector<8x32xf32>
    %c1_56 = arith.constant 1 : index
    %c0_57 = arith.constant 0 : index
    %c0_58 = arith.constant 0 : index
    %138 = vector.load %arg16[%c1_56, %c0_57, %c0_58] : memref<2x8x32xf32, #tpu.memory_space<vmem>>, vector<1x8x32xf32>
    %139 = vector.shape_cast %138 : vector<1x8x32xf32> to vector<8x32xf32>
    %140 = vector.shape_cast %137 : vector<8x32xf32> to vector<1x8x32xf32>
    tpu.vector_store %arg16[%c1_56, %c0_57, %c0_58], %140 {strides = array<i32>} : memref<2x8x32xf32, #tpu.memory_space<vmem>>, vector<1x8x32xf32>,
    %141 = arith.truncf %137 : vector<8x32xf32> to vector<8x32xbf16>
    %c0_59 = arith.constant 0 : index
    %c0_60 = arith.constant 0 : index
    %142 = vector.load %arg10[%c0_59, %c0_60] : memref<32x128xbf16, #tpu.memory_space<vmem>>, vector<32x128xbf16>
    %cst_61 = arith.constant dense<0.000000e+00> : vector<8x128xf32>
    %143 = tpu.matmul %141, %142, %cst_61 {dimension_numbers = #tpu.dot_dimension_numbers<[1], [0], [0], [1], [0, 0, 1, 1], [], []>} : vector<8x32xbf16>, vector<32x128xbf16>, vector<8x128xf32> -> vector<8x128xf32>
    %c0_62 = arith.constant 0 : index
    %c0_63 = arith.constant 0 : index
    %144 = vector.load %arg11[%c0_62, %c0_63] : memref<32x128xbf16, #tpu.memory_space<vmem>>, vector<32x128xbf16>
    %cst_64 = arith.constant dense<0.000000e+00> : vector<8x128xf32>
    %145 = tpu.matmul %33, %144, %cst_64 {dimension_numbers = #tpu.dot_dimension_numbers<[1], [0], [0], [1], [0, 0, 1, 1], [], []>} : vector<8x32xbf16>, vector<32x128xbf16>, vector<8x128xf32> -> vector<8x128xf32>
    %146 = arith.addf %143, %145 : vector<8x128xf32>
    %c0_65 = arith.constant 0 : index
    %c0_66 = arith.constant 0 : index
    %147 = vector.load %arg12[%c0_65, %c0_66] : memref<1x128xf32, #tpu.memory_space<vmem>>, vector<1x128xf32>
    %148 = vector.broadcast %147 : vector<1x128xf32> to vector<8x128xf32>
    %149 = arith.addf %146, %148 : vector<8x128xf32>
    %c0_67 = arith.constant 0 : index
    %c0_68 = arith.constant 0 : index
    %c0_69 = arith.constant 0 : index
    %150 = vector.load %arg13[%c0_67, %c0_68, %c0_69] : memref<1x8x128xf32, #tpu.memory_space<vmem>>, vector<1x8x128xf32>
    %151 = vector.shape_cast %150 : vector<1x8x128xf32> to vector<8x128xf32>
    %152 = vector.shape_cast %149 : vector<8x128xf32> to vector<1x8x128xf32>
    tpu.vector_store %arg13[%c0_67, %c0_68, %c0_69], %152 {strides = array<i32>} : memref<1x8x128xf32, #tpu.memory_space<vmem>>, vector<1x8x128xf32>,
    %c0_70 = arith.constant 0 : index
    %c0_71 = arith.constant 0 : index
    %c0_72 = arith.constant 0 : index
    %153 = vector.load %arg16[%c0_70, %c0_71, %c0_72] : memref<2x8x32xf32, #tpu.memory_space<vmem>>, vector<2x8x32xf32>
    %c0_73 = arith.constant 0 : index
    %c0_74 = arith.constant 0 : index
    %c0_75 = arith.constant 0 : index
    %154 = vector.load %arg14[%c0_73, %c0_74, %c0_75] : memref<2x8x32xf32, #tpu.memory_space<vmem>>, vector<2x8x32xf32>
    tpu.vector_store %arg14[%c0_73, %c0_74, %c0_75], %153 {strides = array<i32>} : memref<2x8x32xf32, #tpu.memory_space<vmem>>, vector<2x8x32xf32>,
    return
  }
  func.func @transform_0(%arg0: i32) -> (i32, i32, i32) {
    %c0_i32 = arith.constant 0 : i32
    %c0_i32_0 = arith.constant 0 : i32
    %c0_i32_1 = arith.constant 0 : i32
    return %arg0, %c0_i32, %c0_i32_0 : i32, i32, i32
  }
  func.func @transform_1(%arg0: i32) -> (i32, i32, i32) {
    %c0_i32 = arith.constant 0 : i32
    %c0_i32_0 = arith.constant 0 : i32
    %c0_i32_1 = arith.constant 0 : i32
    %c0_i32_2 = arith.constant 0 : i32
    return %c0_i32, %c0_i32_0, %c0_i32_1 : i32, i32, i32
  }
  func.func @transform_2(%arg0: i32) -> (i32, i32, i32) {
    %c0_i32 = arith.constant 0 : i32
    %c0_i32_0 = arith.constant 0 : i32
    %c0_i32_1 = arith.constant 0 : i32
    %c0_i32_2 = arith.constant 0 : i32
    return %c0_i32, %c0_i32_0, %c0_i32_1 : i32, i32, i32
  }
  func.func @transform_3(%arg0: i32) -> (i32, i32) {
    %c0_i32 = arith.constant 0 : i32
    %c0_i32_0 = arith.constant 0 : i32
    %c0_i32_1 = arith.constant 0 : i32
    return %c0_i32, %c0_i32_0 : i32, i32
  }
  func.func @transform_4(%arg0: i32) -> (i32, i32) {
    %c0_i32 = arith.constant 0 : i32
    %c0_i32_0 = arith.constant 0 : i32
    %c0_i32_1 = arith.constant 0 : i32
    return %c0_i32, %c0_i32_0 : i32, i32
  }
  func.func @transform_5(%arg0: i32) -> (i32, i32) {
    %c0_i32 = arith.constant 0 : i32
    %c0_i32_0 = arith.constant 0 : i32
    %c0_i32_1 = arith.constant 0 : i32
    return %c0_i32, %c0_i32_0 : i32, i32
  }
  func.func @transform_6(%arg0: i32) -> (i32, i32, i32) {
    %c0_i32 = arith.constant 0 : i32
    %c0_i32_0 = arith.constant 0 : i32
    %c0_i32_1 = arith.constant 0 : i32
    %c0_i32_2 = arith.constant 0 : i32
    return %c0_i32, %c0_i32_0, %c0_i32_1 : i32, i32, i32
  }
  func.func @transform_7(%arg0: i32) -> (i32, i32, i32) {
    %c0_i32 = arith.constant 0 : i32
    %c0_i32_0 = arith.constant 0 : i32
    %c0_i32_1 = arith.constant 0 : i32
    %c0_i32_2 = arith.constant 0 : i32
    return %c0_i32, %c0_i32_0, %c0_i32_1 : i32, i32, i32
  }
  func.func @transform_8(%arg0: i32) -> (i32, i32, i32) {
    %c0_i32 = arith.constant 0 : i32
    %c0_i32_0 = arith.constant 0 : i32
    %c0_i32_1 = arith.constant 0 : i32
    %c0_i32_2 = arith.constant 0 : i32
    return %c0_i32, %c0_i32_0, %c0_i32_1 : i32, i32, i32
  }
  func.func @transform_9(%arg0: i32) -> (i32, i32) {
    %c0_i32 = arith.constant 0 : i32
    %c0_i32_0 = arith.constant 0 : i32
    %c0_i32_1 = arith.constant 0 : i32
    return %c0_i32, %c0_i32_0 : i32, i32
  }
  func.func @transform_10(%arg0: i32) -> (i32, i32) {
    %c0_i32 = arith.constant 0 : i32
    %c0_i32_0 = arith.constant 0 : i32
    %c0_i32_1 = arith.constant 0 : i32
    return %c0_i32, %c0_i32_0 : i32, i32
  }
  func.func @transform_11(%arg0: i32) -> (i32, i32) {
    %c0_i32 = arith.constant 0 : i32
    %c0_i32_0 = arith.constant 0 : i32
    %c0_i32_1 = arith.constant 0 : i32
    return %c0_i32, %c0_i32_0 : i32, i32
  }
  func.func @transform_12(%arg0: i32) -> (i32, i32, i32) {
    %c0_i32 = arith.constant 0 : i32
    %c0_i32_0 = arith.constant 0 : i32
    %c0_i32_1 = arith.constant 0 : i32
    return %arg0, %c0_i32, %c0_i32_0 : i32, i32, i32
  }
  func.func @transform_13(%arg0: i32) -> (i32, i32, i32) {
    %c0_i32 = arith.constant 0 : i32
    %c0_i32_0 = arith.constant 0 : i32
    %c0_i32_1 = arith.constant 0 : i32
    %c0_i32_2 = arith.constant 0 : i32
    return %c0_i32, %c0_i32_0, %c0_i32_1 : i32, i32, i32
  }
  func.func @transform_14(%arg0: i32) -> (i32, i32, i32) {
    %c0_i32 = arith.constant 0 : i32
    %c0_i32_0 = arith.constant 0 : i32
    %c0_i32_1 = arith.constant 0 : i32
    return %arg0, %c0_i32, %c0_i32_0 : i32, i32, i32
  }
}

</mosaic_0001>

<bundles_post_ra>
// kernel: decoder_forward.1
= control target key start
LH: loop header
LB: loop body
LE: loop exit
PB: predicated region body
PF: predicated region fallthrough
CT: control target
= control target key end

     0   :  { %s3083_s0 = inlined_call_operand.vmem [shape: bf16[4,8,32], index: 0, kind: input, shape index: {}]   ;;  %s3084_s1 = inlined_call_operand.vmem [shape: bf16[8,16,32], index: 1, kind: input, shape index: {}]   ;;  %s3085_s2 = inlined_call_operand.vmem [shape: f32[2,8,32], index: 2, kind: input, shape index: {}]   ;;  %s3086_s3 = inlined_call_operand.vmem [shape: bf16[32,32], index: 3, kind: input, shape index: {}]   ;;  %s3087_s4 = inlined_call_operand.vmem [shape: bf16[32,96], index: 4, kind: input, shape index: {}]   ;;  %s3088_s5 = inlined_call_operand.vmem [shape: bf16[32,96], index: 5, kind: input, shape index: {}]   ;;  %s3089_s6 = inlined_call_operand.vmem [shape: bf16[1,32,96], index: 6, kind: input, shape index: {}]   ;;  %s3090_s7 = inlined_call_operand.vmem [shape: bf16[2,32,96], index: 7, kind: input, shape index: {}]   ;;  %s3091_s8 = inlined_call_operand.vmem [shape: f32[2,4,32], index: 8, kind: input, shape index: {}]   ;;  %s3092_s9 = inlined_call_operand.vmem [shape: bf16[32,128], index: 9, kind: input, shape index: {}]   ;;  %s3093_s10 = inlined_call_operand.vmem [shape: bf16[32,128], index: 10, kind: input, shape index: {}]   ;;  %s3094_s11 = inlined_call_operand.vmem [shape: f32[1,128], index: 11, kind: input, shape index: {}]   ;;  %s3095_s12 = inlined_call_operand.hbm [shape: f32[4,8,128], index: 12, kind: output, shape index: {0}]   ;;  %s3096_s13 = inlined_call_operand.hbm [shape: f32[2,8,32], index: 13, kind: output, shape index: {1}]   ;;  %s3097_s14 = inlined_call_operand.hbm [shape: f32[4,8,16], index: 14, kind: output, shape index: {2}]  }
   0x1   :  { %3113 = sst [smem:[#allocation14_spill]] %s3083_s0 }
   0x2   :  { %3114 = sst [smem:[#allocation15_spill]] %s3084_s1 }
   0x3   :  { %3115 = sst [smem:[#allocation16_spill]] %s3085_s2 }
   0x4   :  { %3116 = sst [smem:[#allocation17_spill]] %s3086_s3 }
   0x5   :  { %3117 = sst [smem:[#allocation18_spill]] %s3087_s4 }
   0x6   :  { %20 = vsyncpa [#allocation4], 0 }
   0x7   :  { %22 = vsyncpa [#allocation4 + $0x1], 0 }
   0x8   :  { %23 = vsyncpa [#allocation6], 0  ;;  %s2299_s29 = smov 0   ;;  %s2301_s30 = smov 0  }
   0x9   :  { %s2303_s15 = smov 0   ;;  %s2305_s16 = smov 0  }
   0xa LB: > { %3118 = sst [smem:[#allocation10_spill]] %s2207_s30  ;;  %s2318_s17 = sadd.s32 4294967295, %s2215_s16   ;;  %s2215_s16 = sphi %s2305_s16, %s3144_s16   ;;  %s2211_s15 = sphi %s2303_s15, %s3147_s15   ;;  %s2207_s30 = sphi %s2301_s30, %s3146_s30   ;;  %s2203_s29 = sphi %s2299_s29, %s3145_s29  }
   0xb   : > { %3119 = sst [smem:[#allocation11_spill]] %s2211_s15  ;;  %s3098_s18 = sadd.s32 4294967294, %s2215_s16  }
   0xc   : > { %s2322_s19 = sadd.s32 1, %s2215_s16   ;;  %s293_s20 = sadd.s32 1, %s2211_s15 }
   0xd   : > { %3120 = sst [smem:[#allocation12_spill]] %s2322_s19  ;;  %s290_s21 = ssub.s32 %s2215_s16, %s2322_s19 }
   0xe   : > { %p303_p0 = scmp.ne.s32.totalorder %s2211_s15, %s2207_s30  ;;  %p291_p1 = scmp.eq.s32.totalorder %s290_s21, 0 }
   0xf   : > { %p304_p2 = scmp.eq.s32.totalorder %s2318_s17, 3  ;;  %p309_p3 = scmp.ne.s32.totalorder %s2207_s30, %s2203_s29 }
  0x10   : > { %p310_p4 = scmp.eq.s32.totalorder %s3098_s18, 3  ;;  %p1815_p7 = scmp.ge.s32.totalorder %s2215_s16, 1 }
  0x11   : > { %s2334_s22 = scalar_select %p291_p1, %s2211_s15, %s293_s20  }
  0x12   : > { %p2338_p5 = por %p304_p2, %p303_p0  ;;  %p2342_p6 = por %p310_p4, %p309_p3 }
  0x13   : > { %3121 = sst [smem:[#allocation13_spill]] %s2334_s22  ;;  %p415_p8 = scmp.lt.s32.totalorder %s2215_s16, 5 }
  0x15   : > { %p416_p9 = pnand %p1815_p7, %p415_p8 }
  0x16   : > { %s453_s25 = sand.u32 (!%p416_p9), 1, %s2207_s30   ;;  %p465_p10 = scmp.lt.s32.totalorder (!%p416_p9), %s2318_s17, 3 }
  0x17   : > { %419 = sbr.rel (%p416_p9) target bundleno = 2105 (0x839), region = 68  ;;  %s2350_s26 = sshll.u32 (!%p416_p9), %s453_s25, 3 }
  0x18   : > { %s3124_s0 = sld [smem:[#allocation14_spill]] (!%p416_p9)  ;;  %s3112_s22 = scalar_lea.vmem (!%p416_p9), [#allocation7], %s2350_s26 }
  0x19   : > { %p1819_p11 = scmp.ne.s32.totalorder (!%p416_p9), %s2318_s17, 0 }
  0x1c   : > { %s466_s27 = scalar_select %p465_p10, %s2318_s17, 3 }
  0x1d   : > { %473 = sbr.rel (%p1819_p11) target bundleno = 38 (0x26), region = 72  ;;  %s3125_s2 = sld [smem:[#allocation16_spill]] (!%p1819_p11) }
  0x1e   : > { %s1818_s28 = sshll.u32 %s466_s27, 2 }
  0x1f   : > { %s2356_s21 = scalar_lea.vmem %s3124_s0, %s1818_s28 }
  0x22   : > { %vm476_vm0 = vcmask 261120  }
  0x23   : > { %v474_v0 = vld [vmem:[%s3125_s2] sm:$0xff]  ;;  %v475_v1 = vld [vmem:[%s3125_s2 + $0x8] sm:$0xff] }
  0x24   : > { %477 = vst.msk [vmem:[#allocation2] sm:$0xff] %vm476_vm0, %v474_v0 }
  0x25   : > { %478 = vst.msk [vmem:[#allocation2 + $0x8] sm:$0xff] %vm476_vm0, %v475_v1 }
  0x26 PF: > { %s3126_s3 = sld [smem:[#allocation17_spill]]  ;;  %vm515_vm1 = vcmask 261120   ;;  %vm657_vm2 = vcmask 130112   ;;  %vm680_vm3 = vcmask 1041409   ;;  %vm682_vm4 = vcmask 1042434   ;;  %s2218_s29 = smov 64  }
  0x27   : > { %s3127_s1 = sld [smem:[#allocation15_spill]]  ;;  %vm684_vm5 = vcmask 1043459   ;;  %vm686_vm6 = vcmask 1044484   ;;  %vm688_vm7 = vcmask 1045509   ;;  %vm690_vm8 = vcmask 1046534   ;;  %s2220_s27 = smov 96  }
  0x28   : > { %vm692_vm9 = vcmask 1047559   ;;  %vm3111_vm10 = vcmask 130048   ;;  %s3132_s4 = sld [smem:[#allocation18_spill]]  ;;  %s2221_s30 = smov [#allocation5]  }
  0x29   : > { %s1691_s15 = sshll.u32 %s2221_s30, 4  ;;  %s1693_s25 = sshll.u32 %s3096_s13, 4  ;;  %s1692_s15 = int_to_ptr.vmem [resolvable:$true] %s1691_s15  ;;  %s1694_s25 = int_to_ptr.hbm [resolvable:$true] %s1693_s25 }
  0x2a   : > { %s2222_s28 = smov 128   ;;  %s2223_s20 = smov 8  }
  0x2b   : > { %s1903_s18 = sshll.u32 %s2318_s17, 3  ;;  %s1662_s2 = sand.u32 1, %s2318_s17  }
  0x2c   : > { %v1910_v2 = vld [vmem:[%s3126_s3 + $0x8] sm:$0xff]  ;;  %v1909_v3 = vld [vmem:[%s3126_s3] sm:$0xff]  ;;  %s1706_s19 = scalar_lea.hbm %s3097_s14, %s1903_s18  ;;  %s3140_s3 = scalar_lea.vmem [#allocation3], %s2350_s26 }
  0x2d   : > { %525 = vmatpush.bf16.msra.mxu0 %v1910_v2  ;;  %v497_v4 = vld [vmem:[#allocation2 + $0x8] sm:$0xff]  ;;  %v2377_v6 = vld [vmem:[%s3127_s1] sm:$0xff]   ;;  %v2382_v7 = vld [vmem:[%s3127_s1 + $0x10] sm:$0xff]   ;;  %s3142_s0 = smov %s3140_s3 }
  0x2e   : > { %v498_v5 = vpack.c.bf16 %v497_v4, %v497_v4  ;;  %v2387_v8 = vld [vmem:[%s3127_s1 + $0x8] sm:$0xff]   ;;  %v1927_v9 = vunpack.c.l.bf16 %v2377_v6  ;;  %v1935_v11 = vunpack.c.l.bf16 %v2382_v7  ;;  %v1928_v22 = vunpack.c.h.bf16 %v2377_v6  ;;  %v2415_v30 = vld [vmem:[%s3127_s1 + $0x18] sm:$0xff]   ;;  %v2424_v33 = vld [vmem:[%s3127_s1 + $0x20] sm:$0xff]  }
  0x2f   : > { %v1931_v14 = vunpack.c.l.bf16 %v2387_v8  ;;  %v1936_v25 = vunpack.c.h.bf16 %v2382_v7  ;;  %v1932_v26 = vunpack.c.h.bf16 %v2387_v8  ;;  %v1939_v36 = vunpack.c.l.bf16 %v2415_v30  ;;  %v2442_v46 = vld [vmem:[%s3127_s1 + $0x28] sm:$0xff]   ;;  %v2457_v57 = vld [vmem:[%s3127_s1 + $0x30] sm:$0xff]   ;;  %v2466_v60 = vld [vmem:[%s3127_s1 + $0x38] sm:$0xff]   ;;  %s1663_s1 = scalar_lea.sflag [#allocation4], %s1662_s2 }
  0x30   : > { %v3110_v38 = vunpack.c.l.bf16 %v2424_v33  ;;  %v1940_v42 = vunpack.c.h.bf16 %v2415_v30  ;;  %v3109_v49 = vunpack.c.h.bf16 %v2424_v33  ;;  %v3107_v50 = vunpack.c.h.bf16 %v2442_v46 }
  0x31   : > { %526 = vmatpush.bf16.msra.mxu0 %v1909_v3  ;;  %v3108_v54 = vunpack.c.l.bf16 %v2442_v46  ;;  %v3106_v63 = vunpack.c.l.bf16 %v2457_v57  ;;  %v3104_v1 = vunpack.c.l.bf16 %v2466_v60  ;;  %v3131_v7 = vunpack.c.h.bf16 %v2424_v33 }
  0x34   : > { %1828 = vmatmul.msk.bf16.vlgmr.msra.gmra.mxu0 %vm515_vm1, %v498_v5  ;;  %v3105_v5 = vunpack.c.h.bf16 %v2457_v57 }
  0xb1   : > { %v2390_v10 = vpop.f32.mrf.mxu0 }
  0xb2   : > { %v556_v12 = vperm.slane %v2390_v10, 0  ;;  %v534_v13 = vrot.slane %v2390_v10, 2  ;;  %v533_v15 = vrot.slane %v2390_v10, 1  ;;  %v535_v29 = vrot.slane %v2390_v10, 3 }
  0xb3   : > { %v536_v34 = vrot.slane %v2390_v10, 4  ;;  %v537_v47 = vrot.slane %v2390_v10, 5  ;;  %v538_v56 = vrot.slane %v2390_v10, 6  ;;  %v539_v61 = vrot.slane %v2390_v10, 7 }
  0xb4   : > { %v572_v16 = vmul.f32 %v1927_v9, %v556_v12  ;;  %v558_v17 = vperm.slane %v534_v13, 0  ;;  %v557_v18 = vperm.slane %v533_v15, 0  ;;  %v573_v28 = vmul.f32 %v1928_v22, %v556_v12 }
  0xb5   : > { %v559_v37 = vperm.slane %v535_v29, 0  ;;  %v560_v41 = vperm.slane %v536_v34, 0  ;;  %v561_v53 = vperm.slane %v537_v47, 0  ;;  %v562_v0 = vperm.slane %v538_v56, 0 }
  0xb6   : > { %v588_v19 = vsel %vm515_vm1, %v572_v16, 0.0  ;;  %v576_v20 = vmul.f32 %v1935_v11, %v558_v17  ;;  %v574_v21 = vmul.f32 %v1931_v14, %v557_v18  ;;  %v577_v31 = vmul.f32 %v1936_v25, %v558_v17 }
  0xb7   : > { %589 = vadd.xlane.f32.xlu0 %v588_v19  ;;  %v575_v32 = vmul.f32 %v1932_v26, %v557_v18  ;;  %v591_v35 = vsel %vm515_vm1, %v573_v28, 0.0  ;;  %v578_v43 = vmul.f32 %v1939_v36, %v559_v37  ;;  %v580_v44 = vmul.f32 %v3110_v38, %v560_v41 }
  0xb8   : > { %v600_v23 = vsel %vm515_vm1, %v576_v20, 0.0  ;;  %v594_v24 = vsel %vm515_vm1, %v574_v21, 0.0  ;;  %v603_v39 = vsel %vm515_vm1, %v577_v31, 0.0  ;;  %v579_v45 = vmul.f32 %v1940_v42, %v559_v37 }
  0xb9   : > { %v530_v27 = vpop.f32.mrf.mxu0  ;;  %601 = vadd.xlane.f32.xlu2 %v600_v23  ;;  %595 = vadd.xlane.f32.xlu1 %v594_v24  ;;  %v597_v40 = vsel %vm515_vm1, %v575_v32, 0.0  ;;  %v606_v48 = vsel %vm515_vm1, %v578_v43, 0.0  ;;  %v612_v51 = vsel %vm515_vm1, %v580_v44, 0.0  ;;  %v581_v55 = vmul.f32 %v3109_v49, %v560_v41 }
  0xba   : > { %v609_v52 = vsel %vm515_vm1, %v579_v45, 0.0  ;;  %v583_v58 = vmul.f32 %v3107_v50, %v561_v53  ;;  %v582_v59 = vmul.f32 %v3108_v54, %v561_v53  ;;  %v563_v4 = vperm.slane %v539_v61, 0 }
  0xbb   : > { %v615_v62 = vsel %vm515_vm1, %v581_v55, 0.0  ;;  %v584_v10 = vmul.f32 %v3106_v63, %v562_v0  ;;  %v585_v13 = vmul.f32 %v3105_v5, %v562_v0  ;;  %v3103_v16 = vunpack.c.h.bf16 %v2466_v60 }
  0xbc   : > { %v621_v2 = vsel %vm515_vm1, %v583_v58, 0.0  ;;  %v618_v3 = vsel %vm515_vm1, %v582_v59, 0.0  ;;  %v586_v12 = vmul.f32 %v3104_v1, %v563_v4 }
  0xbd   : > { %v624_v15 = vsel %vm515_vm1, %v584_v10, 0.0  ;;  %v627_v18 = vsel %vm515_vm1, %v585_v13, 0.0  ;;  %v587_v19 = vmul.f32 %v3103_v16, %v563_v4 }
  0xbe   : > { %v630_v17 = vsel %vm515_vm1, %v586_v12, 0.0 }
  0xbf   : > { %592 = vadd.xlane.f32.xlu0 %v591_v35  ;;  %v633_v20 = vsel %vm515_vm1, %v587_v19, 0.0  ;;  %v652_v35 = vlaneseq }
  0xc1   : > { %604 = vadd.xlane.f32.xlu2 %v603_v39  ;;  %598 = vadd.xlane.f32.xlu1 %v597_v40  ;;  %v2506_v37 = vand.u32 127, %v652_v35 }
  0xc3   : > { %v2511_v40 = vadd.s32 4294967288, %v2506_v37 }
  0xc7   : > { %607 = vadd.xlane.f32.xlu0 %v606_v48 }
  0xc9   : > { %613 = vadd.xlane.f32.xlu2 %v612_v51  ;;  %610 = vadd.xlane.f32.xlu1 %v609_v52 }
  0xcf   : > { %616 = vadd.xlane.f32.xlu0 %v615_v62 }
  0xd1   : > { %622 = vadd.xlane.f32.xlu2 %v621_v2  ;;  %619 = vadd.xlane.f32.xlu1 %v618_v3 }
  0xd7   : > { %625 = vadd.xlane.f32.xlu0 %v624_v15 }
  0xd9   : > { %631 = vadd.xlane.f32.xlu2 %v630_v17  ;;  %628 = vadd.xlane.f32.xlu1 %v627_v18 }
  0xdf   : > { %634 = vadd.xlane.f32.xlu0 %v633_v20 }
 0x12a   : > { %v2488_v21 = vpop.xlane.xlu0 %589 }
 0x12b   : > { %v654_v51 = vperm.slane %v2488_v21, %v2506_v37 }
 0x12c   : > { %v2490_v23 = vpop.xlane.xlu2 %601  ;;  %v2492_v24 = vpop.xlane.xlu1 %595 }
 0x12d   : > { %v659_v45 = vperm.slane %v2492_v24, %v2506_v37  ;;  %v662_v55 = vperm.slane %v2490_v23, %v2506_v37 }
 0x132   : > { %v2494_v27 = vpop.xlane.xlu0 %592 }
 0x133   : > { %v656_v47 = vperm.slane %v2494_v27, %v2511_v40 }
 0x134   : > { %v2496_v28 = vpop.xlane.xlu2 %604  ;;  %v2498_v29 = vpop.xlane.xlu1 %598 }
 0x135   : > { %v660_v43 = vperm.slane %v2498_v29, %v2511_v40  ;;  %v663_v48 = vperm.slane %v2496_v28, %v2511_v40  ;;  %v658_v59 = vsel %vm657_vm2, %v656_v47, %v654_v51 }
 0x137   : > { %v661_v52 = vsel %vm657_vm2, %v660_v43, %v659_v45  ;;  %v664_v62 = vsel %vm657_vm2, %v663_v48, %v662_v55 }
 0x138   : > { %v681_v0 = vsel %vm680_vm3, %v661_v52, %v658_v59 }
 0x139   : > { %v683_v17 = vsel %vm682_vm4, %v664_v62, %v681_v0 }
 0x13a   : > { %v2500_v31 = vpop.xlane.xlu0 %607 }
 0x13b   : > { %v665_v61 = vperm.slane %v2500_v31, %v2506_v37 }
 0x13c   : > { %v2502_v32 = vpop.xlane.xlu2 %613  ;;  %v2504_v34 = vpop.xlane.xlu1 %610 }
 0x13d   : > { %v666_v53 = vperm.slane %v2504_v34, %v2511_v40  ;;  %v668_v2 = vperm.slane %v2502_v32, %v2506_v37 }
 0x13f   : > { %v667_v4 = vsel %vm657_vm2, %v666_v53, %v665_v61  ;;  %v2217_v61 = vmov 0  }
 0x140   : > { %v685_v18 = vsel %vm684_vm5, %v667_v4, %v683_v17  ;;  %2023 = vset.pattern.permute.xlu1 %v2217_v61  ;;  %2022 = vset.pattern.permute.xlu0 %v2217_v61 }
 0x141   : > { %2021 = vset.pattern.permute.xlu2 %v2217_v61 }
 0x142   : > { %v2508_v39 = vpop.xlane.xlu0 %616 }
 0x143   : > { %v669_v56 = vperm.slane %v2508_v39, %v2511_v40 }
 0x144   : > { %v2513_v41 = vpop.xlane.xlu1 %619  ;;  %v2517_v44 = vpop.xlane.xlu2 %622 }
 0x145   : > { %v672_v10 = vperm.slane %v2517_v44, %v2511_v40  ;;  %v671_v12 = vperm.slane %v2513_v41, %v2506_v37  ;;  %v670_v13 = vsel %vm657_vm2, %v669_v56, %v668_v2 }
 0x146   : > { %v687_v43 = vsel %vm686_vm6, %v670_v13, %v685_v18 }
 0x147   : > { %v673_v35 = vsel %vm657_vm2, %v672_v10, %v671_v12 }
 0x148   : > { %v689_v52 = vsel %vm688_vm7, %v673_v35, %v687_v43 }
 0x14a   : > { %v2534_v58 = vpop.xlane.xlu0 %625 }
 0x14b   : > { %v674_v19 = vperm.slane %v2534_v58, %v2506_v37 }
 0x14c   : > { %v2543_v3 = vpop.xlane.xlu1 %628  ;;  %v2557_v20 = vpop.xlane.xlu2 %631 }
 0x14d   : > { %v675_v15 = vperm.slane %v2543_v3, %v2511_v40  ;;  %v677_v48 = vperm.slane %v2557_v20, %v2506_v37 }
 0x14f   : > { %v676_v47 = vsel %vm657_vm2, %v675_v15, %v674_v19 }
 0x150   : > { %v691_v55 = vsel %vm690_vm8, %v676_v47, %v689_v52 }
 0x152   : > { %v2561_v45 = vpop.xlane.xlu0 %634 }
 0x153   : > { %v678_v51 = vperm.slane %v2561_v45, %v2511_v40 }
 0x155   : > { %v679_v53 = vsel %vm657_vm2, %v678_v51, %v677_v48 }
 0x156   : > { %v693_v56 = vsel %vm692_vm9, %v679_v53, %v691_v55 }
 0x157   : > { %v696_v59 = vsel %vm3111_vm10, %v693_v56, -inf }
 0x158   : > { %697 = vmax.xlane.f32.xlu1 %v696_v59 }
 0x1cb   : > { %v2573_v62 = vpop.xlane.xlu1 %697 }
 0x1cc   : > { %v701_v0 = vperm.slane %v2573_v62, 1  ;;  %v700_v2 = vperm.slane %v2573_v62, 0  ;;  %v702_v13 = vperm.slane %v2573_v62, 2  ;;  %v704_v15 = vperm.slane %v2573_v62, 4 }
 0x1cd   : > { %v705_v48 = vperm.slane %v2573_v62, 5  ;;  %v707_v61 = vperm.slane %v2573_v62, 7 }
 0x1ce   : > { %v718_v4 = vsub.f32 %v2492_v24, %v701_v0  ;;  %v717_v10 = vsub.f32 %v2494_v27, %v700_v2  ;;  %v716_v12 = vsub.f32 %v2488_v21, %v700_v2  ;;  %v721_v35 = vsub.f32 %v2496_v28, %v702_v13 }
 0x1cf   : > { %v724_v43 = vsub.f32 %v2502_v32, %v704_v15  ;;  %v719_v24 = vsub.f32 %v2498_v29, %v701_v0  ;;  %v703_v27 = vperm.slane %v2573_v62, 3  ;;  %v727_v32 = vsub.f32 %v2517_v44, %v705_v48 }
 0x1d0   : > { %v736_v17 = vmul.f32 1.442695, %v718_v4  ;;  %v734_v18 = vmul.f32 1.442695, %v717_v10  ;;  %v732_v19 = vmul.f32 1.442695, %v716_v12  ;;  %v720_v55 = vsub.f32 %v2490_v23, %v702_v13 }
 0x1d1   : > { %v742_v47 = vmul.f32 1.442695, %v721_v35  ;;  %v748_v21 = vmul.f32 1.442695, %v724_v43  ;;  %v738_v52 = vmul.f32 1.442695, %v719_v24  ;;  %v723_v29 = vsub.f32 %v2504_v34, %v703_v27 }
 0x1d2   : > { %2025 = vpow2.f32 %v736_v17  ;;  %v754_v59 = vmul.f32 1.442695, %v727_v32  ;;  %v740_v2 = vmul.f32 1.442695, %v720_v55  ;;  %v726_v44 = vsub.f32 %v2513_v41, %v705_v48 }
 0x1d3   : > { %2027 = vpow2.f32 %v734_v18  ;;  %v746_v56 = vmul.f32 1.442695, %v723_v29  ;;  %v730_v23 = vsub.f32 %v2557_v20, %v707_v61  ;;  %v722_v10 = vsub.f32 %v2500_v31, %v703_v27 }
 0x1d4   : > { %2029 = vpow2.f32 %v732_v19  ;;  %v752_v12 = vmul.f32 1.442695, %v726_v44  ;;  %v706_v13 = vperm.slane %v2573_v62, 6  ;;  %v725_v31 = vsub.f32 %v2508_v39, %v704_v15 }
 0x1d5   : > { %2031 = vpow2.f32 %v742_v47  ;;  %v760_v17 = vmul.f32 1.442695, %v730_v23  ;;  %v744_v19 = vmul.f32 1.442695, %v722_v10  ;;  %v731_v48 = vsub.f32 %v2561_v45, %v707_v61 }
 0x1d6   : > { %2033 = vpow2.f32 %v748_v21  ;;  %v729_v20 = vsub.f32 %v2543_v3, %v706_v13  ;;  %v750_v24 = vmul.f32 1.442695, %v725_v31  ;;  %v728_v3 = vsub.f32 %v2534_v58, %v706_v13 }
 0x1d7   : > { %2035 = vpow2.f32 %v738_v52  ;;  %v762_v52 = vmul.f32 1.442695, %v731_v48 }
 0x1d8   : > { %v2587_v51 = vpop.eup %2025  ;;  %2037 = vpow2.f32 %v746_v56  ;;  %v758_v62 = vmul.f32 1.442695, %v729_v20  ;;  %v756_v39 = vmul.f32 1.442695, %v728_v3 }
 0x1d9   : > { %v2589_v53 = vpop.eup %2027  ;;  %787 = vperm.xlu1 %2023, %v2587_v51   ;;  %2039 = vpow2.f32 %v754_v59 }
 0x1da   : > { %v2592_v28 = vpop.eup %2029  ;;  %784 = vperm.xlu0 %2022, %v2589_v53   ;;  %2041 = vpow2.f32 %v740_v2 }
 0x1db   : > { %781 = vperm.xlu2 %2021, %v2592_v28   ;;  %v2600_v0 = vpop.eup %2031  ;;  %2043 = vpow2.f32 %v752_v12 }
 0x1dc   : > { %v2602_v4 = vpop.eup %2033  ;;  %2045 = vpow2.f32 %v760_v17 }
 0x1dd   : > { %v2605_v34 = vpop.eup %2035  ;;  %2047 = vpow2.f32 %v744_v19 }
 0x1de   : > { %v2613_v18 = vpop.eup %2037  ;;  %2049 = vpow2.f32 %v758_v62 }
 0x1df   : > { %v2615_v35 = vpop.eup %2039  ;;  %2051 = vpow2.f32 %v750_v24 }
 0x1e0   : > { %v2618_v41 = vpop.eup %2041  ;;  %2053 = vpow2.f32 %v756_v39 }
 0x1e1   : > { %796 = vperm.xlu1 %2023, %v2600_v0   ;;  %v2624_v43 = vpop.eup %2043  ;;  %2055 = vpow2.f32 %v762_v52 }
 0x1e2   : > { %805 = vperm.xlu0 %2022, %v2602_v4   ;;  %v2626_v47 = vpop.eup %2045 }
 0x1e3   : > { %790 = vperm.xlu2 %2021, %v2605_v34   ;;  %v2629_v27 = vpop.eup %2047 }
 0x1e4   : > { %v2634_v21 = vpop.eup %2049 }
 0x1e5   : > { %v2637_v15 = vpop.eup %2051 }
 0x1e6   : > { %v2641_v29 = vpop.eup %2053 }
 0x1e7   : > { %v2644_v32 = vpop.eup %2055 }
 0x1e9   : > { %802 = vperm.xlu1 %2023, %v2613_v18  }
 0x1ea   : > { %814 = vperm.xlu0 %2022, %v2615_v35  }
 0x1eb   : > { %793 = vperm.xlu2 %2021, %v2618_v41  }
 0x1f1   : > { %811 = vperm.xlu1 %2023, %v2624_v43  }
 0x1f2   : > { %823 = vperm.xlu0 %2022, %v2626_v47  }
 0x1f3   : > { %799 = vperm.xlu2 %2021, %v2629_v27  }
 0x1f9   : > { %820 = vperm.xlu1 %2023, %v2634_v21  }
 0x1fb   : > { %808 = vperm.xlu2 %2021, %v2637_v15  }
 0x203   : > { %817 = vperm.xlu2 %2021, %v2641_v29  }
 0x20b   : > { %826 = vperm.xlu2 %2021, %v2644_v32  }
 0x235   : > { %v782_v58 = vpop.permute.xlu2 %781 }
 0x236   : > { %v828_v31 = vperm.slane %v782_v58, %v2506_v37 }
 0x23d   : > { %v791_v55 = vpop.permute.xlu2 %790 }
 0x23e   : > { %v832_v62 = vperm.slane %v791_v55, %v2511_v40 }
 0x245   : > { %v794_v56 = vpop.permute.xlu2 %793 }
 0x246   : > { %v834_v39 = vperm.slane %v794_v56, %v2506_v37 }
 0x24b   : > { %v788_v59 = vpop.permute.xlu1 %787 }
 0x24c   : > { %v785_v2 = vpop.permute.xlu0 %784  ;;  %v831_v17 = vperm.slane %v788_v59, %v2506_v37 }
 0x24d   : > { %v800_v44 = vpop.permute.xlu2 %799  ;;  %v829_v19 = vperm.slane %v785_v2, %v2511_v40 }
 0x24e   : > { %v833_v48 = vsel %vm657_vm2, %v832_v62, %v831_v17  ;;  %v837_v16 = vperm.slane %v800_v44, %v2506_v37 }
 0x24f   : > { %v830_v52 = vsel %vm657_vm2, %v829_v19, %v828_v31 }
 0x250   : > { %v852_v58 = vsel %vm680_vm3, %v833_v48, %v830_v52 }
 0x253   : > { %v797_v23 = vpop.permute.xlu1 %796 }
 0x254   : > { %v806_v10 = vpop.permute.xlu0 %805  ;;  %v835_v20 = vperm.slane %v797_v23, %v2511_v40 }
 0x255   : > { %v809_v12 = vpop.permute.xlu2 %808  ;;  %v840_v55 = vperm.slane %v806_v10, %v2506_v37 }
 0x256   : > { %v836_v59 = vsel %vm657_vm2, %v835_v20, %v834_v39 }
 0x257   : > { %v853_v17 = vsel %vm682_vm4, %v836_v59, %v852_v58 }
 0x25b   : > { %v803_v45 = vpop.permute.xlu1 %802 }
 0x25c   : > { %v815_v61 = vpop.permute.xlu0 %814  ;;  %v838_v24 = vperm.slane %v803_v45, %v2511_v40  ;;  %v841_v45 = vperm.slane %v809_v12, %v2511_v40 }
 0x25d   : > { %v818_v13 = vpop.permute.xlu2 %817  ;;  %v844_v19 = vperm.slane %v815_v61, %v2511_v40 }
 0x25e   : > { %v839_v2 = vsel %vm657_vm2, %v838_v24, %v837_v16  ;;  %v842_v24 = vsel %vm657_vm2, %v841_v45, %v840_v55  ;;  %v846_v10 = vperm.slane %v818_v13, %v2506_v37 }
 0x25f   : > { %v854_v44 = vsel %vm684_vm5, %v839_v2, %v853_v17 }
 0x263   : > { %v812_v3 = vpop.permute.xlu1 %811 }
 0x264   : > { %v843_v23 = vperm.slane %v812_v3, %v2506_v37  ;;  %v824_v1 = vpop.permute.xlu0 %823  ;;  %v855_v3 = vsel %vm686_vm6, %v842_v24, %v854_v44 }
 0x265   : > { %v827_v56 = vpop.permute.xlu2 %826  ;;  %v849_v16 = vperm.slane %v824_v1, %v2506_v37 }
 0x266   : > { %v845_v20 = vsel %vm657_vm2, %v844_v19, %v843_v23  ;;  %v850_v31 = vperm.slane %v827_v56, %v2511_v40 }
 0x267   : > { %v856_v61 = vsel %vm688_vm7, %v845_v20, %v855_v3 }
 0x268   : > { %v851_v48 = vsel %vm657_vm2, %v850_v31, %v849_v16 }
 0x26b   : > { %v821_v62 = vpop.permute.xlu1 %820 }
 0x26c   : > { %v847_v12 = vperm.slane %v821_v62, %v2511_v40 }
 0x26e   : > { %v848_v39 = vsel %vm657_vm2, %v847_v12, %v846_v10 }
 0x26f   : > { %v857_v52 = vsel %vm690_vm8, %v848_v39, %v856_v61 }
 0x270   : > { %v858_v1 = vsel %vm692_vm9, %v851_v48, %v857_v52 }
 0x271   : > { %v860_v59 = vsel %vm3111_vm10, %v858_v1, 0.0 }
 0x272   : > { %861 = vadd.xlane.f32.xlu1 %v860_v59 }
 0x2e5   : > { %v2679_v2 = vpop.xlane.xlu1 %861 }
 0x2e6   : > { %v864_v13 = vperm.slane %v2679_v2, 0  ;;  %v865_v23 = vperm.slane %v2679_v2, 1  ;;  %v2684_v58 = vperm.slane %v2679_v2, 2  ;;  %v869_v55 = vperm.slane %v2679_v2, 5 }
 0x2e7   : > { %v2689_v56 = vperm.slane %v2679_v2, 3  ;;  %v2697_v48 = vperm.slane %v2679_v2, 4 }
 0x2e8   : > { %2057 = vrcp.f32 %v864_v13  ;;  %v889_v31 = vand.u32 2147483647, %v864_v13  ;;  %v891_v62 = vand.u32 2147483648, %v864_v13  ;;  %v969_v52 = vand.u32 2147483647, %v869_v55 }
 0x2e9   : > { %2059 = vrcp.f32 %v865_v23  ;;  %vm885_vm12 = vweird.f32 %v864_v13  ;;  %v907_v49 = vand.u32 2147483648, %v865_v23  ;;  %vm901_vm10 = vweird.f32 %v865_v23 }
 0x2ea   : > { %2061 = vrcp.f32 %v2684_v58  ;;  %vm890_vm14 = vcmp.eq.f32.partialorder %v889_v31, 8.507059e+37  ;;  %v892_v5 = vor.u32 1.1754944e-38, %v891_v62 }
 0x2eb   : > { %2063 = vrcp.f32 %v869_v55 }
 0x2ec   : > { %2065 = vrcp.f32 %v2689_v56 }
 0x2ed   : > { %2067 = vrcp.f32 %v2697_v48 }
 0x2ee   : > { %v2058_v45 = vpop.eup %2057 }
 0x2ef   : > { %v2060_v17 = vpop.eup %2059  ;;  %v881_v19 = vmul.f32 %v2058_v45, %v864_v13  ;;  %vm886_vm11 = vweird.f32 %v2058_v45  ;;  %v905_v13 = vand.u32 2147483647, %v865_v23 }
 0x2f0   : > { %v2691_v44 = vpop.eup %2061  ;;  %v897_v20 = vmul.f32 %v2060_v17, %v865_v23  ;;  %vm887_vm13 = vmor %vm885_vm12, %vm886_vm11  ;;  %vm902_vm15 = vweird.f32 %v2060_v17  ;;  %vm965_vm11 = vweird.f32 %v869_v55 }
 0x2f1   : > { %v882_v16 = vsub.f32 1.0, %v881_v19  ;;  %v2064_v10 = vpop.eup %2063  ;;  %v913_v3 = vmul.f32 %v2691_v44, %v2684_v58  ;;  %v971_v19 = vand.u32 2147483648, %v869_v55  ;;  %vm2704_vm12 = vmor %vm901_vm10, %vm902_vm15  ;;  %vm906_vm10 = vcmp.eq.f32.partialorder %v905_v13, 8.507059e+37 }
 0x2f2   : > { %v898_v24 = vsub.f32 1.0, %v897_v20  ;;  %v961_v39 = vmul.f32 %v2064_v10, %v869_v55  ;;  %v2699_v50 = vpop.eup %2065  ;;  %vm966_vm0 = vweird.f32 %v2064_v10  ;;  %vm918_vm15 = vweird.f32 %v2691_v44 }
 0x2f3   : > { %v883_v12 = vmul.f32 %v2058_v45, %v882_v16  ;;  %v914_v16 = vsub.f32 1.0, %v913_v3  ;;  %v972_v62 = vor.u32 1.1754944e-38, %v971_v19  ;;  %v2716_v3 = vperm.slane %v2679_v2, 6 }
 0x2f4   : > { %v899_v61 = vmul.f32 %v2060_v17, %v898_v24  ;;  %v962_v59 = vsub.f32 1.0, %v961_v39 }
 0x2f5   : > { %v884_v1 = vadd.f32 %v2058_v45, %v883_v12  ;;  %2069 = vrcp.f32 %v2716_v3 }
 0x2f6   : > { %v900_v63 = vadd.f32 %v2060_v17, %v899_v61  ;;  %v963_v54 = vmul.f32 %v2064_v10, %v962_v59  ;;  %v2068_v61 = vpop.eup %2067 }
 0x2f7   : > { %v888_v20 = vsel %vm887_vm13, %v2058_v45, %v884_v1  ;;  %vm967_vm13 = vmor %vm965_vm11, %vm966_vm0  ;;  %vm917_vm0 = vweird.f32 %v2684_v58  ;;  %v921_v1 = vand.u32 2147483647, %v2684_v58  ;;  %v945_v19 = vmul.f32 %v2068_v61, %v2697_v48 }
 0x2f8   : > { %v893_v24 = vsel %vm890_vm14, %v892_v5, %v888_v20  ;;  %v964_v31 = vadd.f32 %v2064_v10, %v963_v54  ;;  %v904_v5 = vsel %vm2704_vm12, %v2060_v17, %v900_v63  ;;  %vm970_vm14 = vcmp.eq.f32.partialorder %v969_v52, 8.507059e+37  ;;  %vm919_vm11 = vmor %vm917_vm0, %vm918_vm15 }
 0x2f9   : > { %v895_v38 = vmul.f32 %v2589_v53, %v893_v24  ;;  %v894_v12 = vmul.f32 %v2592_v28, %v893_v24  ;;  %v915_v53 = vmul.f32 %v2691_v44, %v914_v16  ;;  %v929_v28 = vmul.f32 %v2699_v50, %v2689_v56 }
 0x2fa   : > { %v968_v23 = vsel %vm967_vm13, %v2064_v10, %v964_v31  ;;  %v908_v54 = vor.u32 1.1754944e-38, %v907_v49  ;;  %v923_v10 = vand.u32 2147483648, %v2684_v58  ;;  %vm922_vm12 = vcmp.eq.f32.partialorder %v921_v1, 8.507059e+37 }
 0x2fb   : > { %1028 = vperm.xlu2 %2021, %v895_v38   ;;  %1025 = vperm.xlu0 %2022, %v894_v12   ;;  %v2713_v55 = vsel %vm970_vm14, %v972_v62, %v968_v23  ;;  %v916_v63 = vadd.f32 %v2691_v44, %v915_v53  ;;  %v930_v17 = vsub.f32 1.0, %v929_v28  ;;  %vm934_vm13 = vweird.f32 %v2699_v50  ;;  %v2070_v24 = vpop.eup %2069 }
 0x2fc   : > { %v974_v38 = vmul.f32 %v2624_v43, %v2713_v55  ;;  %v909_v39 = vsel %vm906_vm10, %v908_v54, %v904_v5  ;;  %v924_v20 = vor.u32 1.1754944e-38, %v923_v10  ;;  %v946_v58 = vsub.f32 1.0, %v945_v19 }
 0x2fd   : > { %v911_v49 = vmul.f32 %v2605_v34, %v909_v39  ;;  %v910_v52 = vmul.f32 %v2587_v51, %v909_v39  ;;  %v920_v43 = vsel %vm919_vm11, %v2691_v44, %v916_v63  ;;  %v931_v59 = vmul.f32 %v2699_v50, %v930_v17  ;;  %v1916_v17 = vld [vmem:[%s3090_s7 + $0x8] sm:$0xff] }
 0x2fe   : > { %1055 = vperm.xlu1 %2023, %v974_v38   ;;  %v2732_v34 = vperm.slane %v2679_v2, 7  ;;  %v925_v51 = vsel %vm922_vm12, %v924_v20, %v920_v43  ;;  %v939_v12 = vand.u32 2147483648, %v2689_v56  ;;  %vm933_vm14 = vweird.f32 %v2689_v56  ;;  %1332 = vmatpush.bf16.msra.mxu3 %v1916_v17 }
 0x2ff   : > { %v932_v16 = vadd.f32 %v2699_v50, %v931_v59  ;;  %v927_v44 = vmul.f32 %v2600_v0, %v925_v51  ;;  %v926_v13 = vmul.f32 %v2618_v41, %v925_v51  ;;  %v937_v31 = vand.u32 2147483647, %v2689_v56  ;;  %vm935_vm10 = vmor %vm933_vm14, %vm934_vm13 }
 0x300   : > { %2071 = vrcp.f32 %v2732_v34  ;;  %v947_v45 = vmul.f32 %v2068_v61, %v946_v58  ;;  %v977_v62 = vmul.f32 %v2070_v24, %v2716_v3  ;;  %v940_v5 = vor.u32 1.1754944e-38, %v939_v12 }
 0x301   : > { %v936_v2 = vsel %vm935_vm10, %v2699_v50, %v932_v16  ;;  %vm938_vm15 = vcmp.eq.f32.partialorder %v937_v31, 8.507059e+37  ;;  %vm950_vm0 = vweird.f32 %v2068_v61  ;;  %v955_v23 = vand.u32 2147483648, %v2697_v48 }
 0x302   : > { %v941_v53 = vsel %vm938_vm15, %v940_v5, %v936_v2  ;;  %v948_v0 = vadd.f32 %v2068_v61, %v947_v45  ;;  %v978_v41 = vsub.f32 1.0, %v977_v62  ;;  %vm949_vm11 = vweird.f32 %v2697_v48 }
 0x303   : > { %1034 = vperm.xlu2 %2021, %v911_v49   ;;  %1031 = vperm.xlu0 %2022, %v910_v52   ;;  %v943_v56 = vmul.f32 %v2613_v18, %v941_v53  ;;  %v942_v54 = vmul.f32 %v2629_v27, %v941_v53  ;;  %v953_v50 = vand.u32 2147483647, %v2697_v48  ;;  %vm951_vm12 = vmor %vm949_vm11, %vm950_vm0  ;;  %v956_v10 = vor.u32 1.1754944e-38, %v955_v23  ;;  %v1915_v18 = vld [vmem:[%s3090_s7] sm:$0xff] }
 0x304   : > { %v952_v38 = vsel %vm951_vm12, %v2068_v61, %v948_v0  ;;  %v979_v39 = vmul.f32 %v2070_v24, %v978_v41  ;;  %v2756_v27 = vld [vmem:[#allocation2] sm:$0xff]  ;;  %vm982_vm14 = vweird.f32 %v2070_v24  ;;  %v987_v52 = vand.u32 2147483648, %v2716_v3  ;;  %1333 = vmatpush.bf16.msra.mxu3 %v1915_v18 }
 0x305   : > { %vm954_vm13 = vcmp.eq.f32.partialorder %v953_v50, 8.507059e+37  ;;  %v1306_v1 = vpack.c.bf16 %v2756_v27, %v2756_v27  ;;  %vm981_vm10 = vweird.f32 %v2716_v3  ;;  %v985_v19 = vand.u32 2147483647, %v2716_v3 }
 0x306   : > { %v2072_v28 = vpop.eup %2071  ;;  %v957_v48 = vsel %vm954_vm13, %v956_v10, %v952_v38  ;;  %v980_v49 = vadd.f32 %v2070_v24, %v979_v39  ;;  %vm983_vm15 = vmor %vm981_vm10, %vm982_vm14  ;;  %v988_v16 = vor.u32 1.1754944e-38, %v987_v52  ;;  %v975_v3 = vmul.f32 %v2615_v35, %v2713_v55  ;;  %v2778_v35 = vld [vmem:[%s3091_s8] sm:$0xf] }
 0x307   : > { %v993_v63 = vmul.f32 %v2072_v28, %v2732_v34  ;;  %v959_v43 = vmul.f32 %v2637_v15, %v957_v48  ;;  %v958_v59 = vmul.f32 %v2602_v4, %v957_v48  ;;  %1855 = vmatmul.msk.bf16.vlgmr.msra.gmra.mxu3 %vm515_vm1, %v1306_v1  ;;  %vm986_vm0 = vcmp.eq.f32.partialorder %v985_v19, 8.507059e+37 }
 0x308   : > { %v984_v20 = vsel %vm983_vm15, %v2070_v24, %v980_v49  ;;  %vm998_vm11 = vweird.f32 %v2072_v28  ;;  %v1003_v15 = vand.u32 2147483648, %v2732_v34  ;;  %vm997_vm12 = vweird.f32 %v2732_v34 }
 0x309   : > { %v994_v61 = vsub.f32 1.0, %v993_v63  ;;  %v989_v58 = vsel %vm986_vm0, %v988_v16, %v984_v20  ;;  %vm999_vm13 = vmor %vm997_vm12, %vm998_vm11  ;;  %v1393_v55 = vperm.slane %v2778_v35, 3  ;;  %v3130_v18 = vunpack.c.l.bf16 %v2424_v33  ;;  %v1912_v33 = vld [vmem:[%s3132_s4 + $0x8] sm:$0xff] }
 0x30a   : > { %v990_v4 = vmul.f32 %v2641_v29, %v989_v58  ;;  %v991_v45 = vmul.f32 %v2634_v21, %v989_v58  ;;  %1298 = vmatpush.bf16.msra.mxu2 %v1912_v33  ;;  %vm3139_vm10 = vcmask 130048  }
 0x30b   : > { %1040 = vperm.xlu2 %2021, %v927_v44   ;;  %1037 = vperm.xlu0 %2022, %v926_v13   ;;  %v995_v51 = vmul.f32 %v2072_v28, %v994_v61  ;;  %v1001_v44 = vand.u32 2147483647, %v2732_v34  ;;  %v1004_v13 = vor.u32 1.1754944e-38, %v1003_v15 }
 0x30d   : > { %v996_v12 = vadd.f32 %v2072_v28, %v995_v51  ;;  %vm1002_vm14 = vcmp.eq.f32.partialorder %v1001_v44, 8.507059e+37  ;;  %v3133_v51 = vunpack.c.l.bf16 %v2442_v46  ;;  %v1911_v44 = vld [vmem:[%s3132_s4] sm:$0xff]  ;;  %s1680_s4 = sshll.u32 %s3140_s3, 4  ;;  %s1681_s4 = int_to_ptr.vmem [resolvable:$true] %s1680_s4 }
 0x30e   : > { %1299 = vmatpush.bf16.msra.mxu2 %v1911_v44 }
 0x30f   : > { %v1000_v24 = vsel %vm999_vm13, %v2072_v28, %v996_v12  ;;  %v1914_v12 = vld [vmem:[%s3088_s5 + $0x8] sm:$0xff] }
 0x310   : > { %v1005_v31 = vsel %vm1002_vm14, %v1004_v13, %v1000_v24  ;;  %1270 = vmatpush.bf16.msra.mxu1 %v1914_v12 }
 0x311   : > { %v1006_v2 = vmul.f32 %v2626_v47, %v1005_v31  ;;  %v1007_v29 = vmul.f32 %v2644_v32, %v1005_v31  ;;  %v3134_v31 = vunpack.c.h.bf16 %v2442_v46 }
 0x313   : > { %1046 = vperm.xlu2 %2021, %v943_v56   ;;  %1043 = vperm.xlu0 %2022, %v942_v54  }
 0x31b   : > { %1052 = vperm.xlu2 %2021, %v959_v43   ;;  %1049 = vperm.xlu0 %2022, %v958_v59  }
 0x323   : > { %1061 = vperm.xlu2 %2021, %v990_v4   ;;  %1058 = vperm.xlu0 %2022, %v975_v3  }
 0x32b   : > { %1067 = vperm.xlu2 %2021, %v1006_v2   ;;  %1064 = vperm.xlu0 %2022, %v991_v45   ;;  %v1924_v45 = vld [vmem:[%s3093_s10 + $0x8] sm:$0xff] }
 0x32c   : > { %1614 = vmatpush.bf16.msrb.mxu2 %v1924_v45 }
 0x333   : > { %1070 = vperm.xlu0 %2022, %v1007_v29   ;;  %1395 = vrot.lane.b32.xlu2 %v1393_v55, %s2218_s29  ;;  %v1913_v29 = vld [vmem:[%s3088_s5] sm:$0xff] }
 0x334   : > { %1271 = vmatpush.bf16.msra.mxu1 %v1913_v29 }
 0x355   : > { %v2782_v34 = vpop.permute.xlu2 %1028 }
 0x356   : > { %v1122_v54 = vmul.f32 %v1928_v22, %v2782_v34  ;;  %v1073_v55 = vperm.slane %v2782_v34, %v2511_v40  ;;  %v479_v34 = vld [vmem:[%s2356_s21] sm:$0xf]  ;;  %s2219_s21 = smov 32  }
 0x357   : > { %1846 = vmatmul.msk.bf16.vlgmr.msra.gmra.mxu2 %vm515_vm1, %v479_v34  ;;  %v3138_v34 = vunpack.c.h.bf16 %v2466_v60 }
 0x358   : > { %v1138_v39 = vsel %vm515_vm1, %v1122_v54, 0.0 }
 0x35d   : > { %v2784_v47 = vpop.permute.xlu2 %1034 }
 0x35e   : > { %v1124_v41 = vmul.f32 %v1932_v26, %v2784_v47 }
 0x360   : > { %v1147_v50 = vsel %vm515_vm1, %v1124_v41, 0.0 }
 0x365   : > { %v2788_v62 = vpop.permute.xlu2 %1040 }
 0x366   : > { %v1079_v54 = vperm.slane %v2788_v62, %v2511_v40 }
 0x36d   : > { %v2786_v21 = vpop.permute.xlu0 %1025  ;;  %v2794_v53 = vpop.permute.xlu2 %1046 }
 0x36e   : > { %v1121_v23 = vmul.f32 %v1927_v9, %v2786_v21  ;;  %v1126_v9 = vmul.f32 %v1936_v25, %v2788_v62  ;;  %v1128_v17 = vmul.f32 %v1940_v42, %v2794_v53  ;;  %v1072_v41 = vperm.slane %v2786_v21, %v2506_v37  ;;  %v1923_v21 = vld [vmem:[%s3093_s10] sm:$0xff] }
 0x36f   : > { %v3135_v62 = vunpack.c.l.bf16 %v2457_v57  ;;  %1615 = vmatpush.bf16.msrb.mxu2 %v1923_v21 }
 0x370   : > { %v2839_v61 = vpop.permute.xlu1 %1055  ;;  %v1165_v1 = vsel %vm515_vm1, %v1128_v17, 0.0 }
 0x371   : > { %v1131_v16 = vmul.f32 %v3133_v51, %v2839_v61 }
 0x373   : > { %v1182_v46 = vsel %vm515_vm1, %v1131_v16, 0.0 }
 0x375   : > { %v2790_v32 = vpop.permute.xlu0 %1031  ;;  %v2812_v38 = vpop.permute.xlu2 %1052 }
 0x376   : > { %v1123_v0 = vmul.f32 %v1931_v14, %v2790_v32  ;;  %v1137_v14 = vsel %vm515_vm1, %v1121_v23, 0.0  ;;  %v1130_v25 = vmul.f32 %v3131_v7, %v2812_v38  ;;  %v1075_v24 = vperm.slane %v2790_v32, %v2506_v37 }
 0x377   : > { %v1139_v22 = vadd.f32 %v1138_v39, %v1137_v14  ;;  %v1076_v32 = vperm.slane %v2784_v47, %v2511_v40  ;;  %v1082_v47 = vperm.slane %v2794_v53, %v2511_v40  ;;  %v1087_v53 = vperm.slane %v2839_v61, %v2506_v37 }
 0x378   : > { %v1146_v56 = vsel %vm515_vm1, %v1123_v0, 0.0  ;;  %v1174_v59 = vsel %vm515_vm1, %v1130_v25, 0.0  ;;  %v1085_v7 = vperm.slane %v2812_v38, %v2511_v40 }
 0x379   : > { %v1148_v8 = vadd.f32 %v1147_v50, %v1146_v56  ;;  %v1140_v52 = vrot.slane %v1139_v22, 4 }
 0x37b   : > { %v1149_v10 = vrot.slane %v1148_v8, 4  ;;  %v1141_v15 = vadd.f32 %v1140_v52, %v1139_v22 }
 0x37d   : > { %v2792_v5 = vpop.permute.xlu0 %1037  ;;  %v1150_v43 = vadd.f32 %v1149_v10, %v1148_v8  ;;  %v2844_v19 = vpop.permute.xlu2 %1061  ;;  %v1142_v50 = vrot.slane %v1141_v15, 2  ;;  %v1074_v10 = vsel %vm657_vm2, %v1073_v55, %v1072_v41 }
 0x37e   : > { %v1125_v26 = vmul.f32 %v1935_v11, %v2792_v5 }
 0x37f   : > { %v1151_v13 = vrot.slane %v1150_v43, 2 }
 0x380   : > { %v1155_v11 = vsel %vm515_vm1, %v1125_v26, 0.0  ;;  %v1077_v26 = vsel %vm657_vm2, %v1076_v32, %v1075_v24  ;;  %v1090_v24 = vperm.slane %v2844_v19, %v2506_v37 }
 0x381   : > { %v1152_v39 = vadd.f32 %v1151_v13, %v1150_v43  ;;  %v1096_v52 = vsel %vm680_vm3, %v1077_v26, %v1074_v10 }
 0x383   : > { %v1153_v61 = vrot.slane %v1152_v39, 1 }
 0x385   : > { %v2802_v28 = vpop.permute.xlu0 %1043 }
 0x386   : > { %v1127_v6 = vmul.f32 %v1939_v36, %v2802_v28  ;;  %v1156_v36 = vsel %vm515_vm1, %v1126_v9, 0.0  ;;  %v1133_v9 = vmul.f32 %v3135_v62, %v2844_v19 }
 0x387   : > { %v1157_v30 = vadd.f32 %v1156_v36, %v1155_v11  ;;  %v1081_v11 = vperm.slane %v2802_v28, %v2506_v37  ;;  %v1387_v28 = vperm.slane %v2778_v35, 2 }
 0x388   : > { %v1164_v49 = vsel %vm515_vm1, %v1127_v6, 0.0  ;;  %v1078_v6 = vperm.slane %v2792_v5, %v2506_v37  ;;  %v1068_v5 = vpop.permute.xlu2 %1067 }
 0x389   : > { %v1166_v20 = vadd.f32 %v1165_v1, %v1164_v49  ;;  %v1158_v4 = vrot.slane %v1157_v30, 4  ;;  %v1191_v1 = vsel %vm515_vm1, %v1133_v9, 0.0  ;;  %v1083_v33 = vsel %vm657_vm2, %v1082_v47, %v1081_v11  ;;  %1389 = vrot.lane.b32.xlu0 %v1387_v28, %s2218_s29 }
 0x38a   : > { %v1080_v43 = vsel %vm657_vm2, %v1079_v54, %v1078_v6  ;;  %v1093_v55 = vperm.slane %v1068_v5, %v2506_v37 }
 0x38b   : > { %v1167_v0 = vrot.slane %v1166_v20, 4  ;;  %v1159_v14 = vadd.f32 %v1158_v4, %v1157_v30  ;;  %v3136_v30 = vunpack.c.h.bf16 %v2457_v57  ;;  %v1097_v13 = vsel %vm682_vm4, %v1080_v43, %v1096_v52 }
 0x38c   : > { %v1098_v32 = vsel %vm684_vm5, %v1083_v33, %v1097_v13  ;;  %v1362_v52 = vperm.slane %v2778_v35, 1 }
 0x38d   : > { %v2825_v63 = vpop.permute.xlu0 %1049  ;;  %v1168_v22 = vadd.f32 %v1167_v0, %v1166_v20  ;;  %v1160_v25 = vrot.slane %v1159_v14, 2  ;;  %v2911_v20 = vpop.f32.mrf.mxu3 }
 0x38e   : > { %v1129_v48 = vmul.f32 %v3130_v18, %v2825_v63  ;;  %v1084_v38 = vperm.slane %v2825_v63, %v2506_v37  ;;  %v1154_v63 = vadd.f32 %v1153_v61, %v1152_v39 }
 0x390   : > { %v1173_v42 = vsel %vm515_vm1, %v1129_v48, 0.0  ;;  %v2899_v48 = vadd.f32 %v1142_v50, %v1141_v15  ;;  %v1086_v45 = vsel %vm657_vm2, %v1085_v7, %v1084_v38  ;;  %v1396_v50 = vpop.permute.xlu2 %1395  ;;  %v1210_v61 = vpack.c.bf16 %v1154_v63, %v1154_v63 }
 0x391   : > { %v1175_v58 = vadd.f32 %v1174_v59, %v1173_v42  ;;  %v1169_v59 = vrot.slane %v1168_v22, 2  ;;  %v1398_v37 = vadd.f32 %v1396_v50, %v2911_v20  ;;  %v1341_v50 = vperm.slane %v2778_v35, 0 }
 0x392   : > { %v1144_v44 = vrot.slane %v2899_v48, 1 }
 0x393   : > { %v1176_v23 = vrot.slane %v1175_v58, 4  ;;  %1400 = vrot.lane.b32.xlu1 %v1398_v37, %s2218_s29 }
 0x394   : > { %v1145_v7 = vadd.f32 %v1144_v44, %v2899_v48 }
 0x395   : > { %v2855_v3 = vpop.permute.xlu0 %1058  ;;  %v1177_v18 = vadd.f32 %v1176_v23, %v1175_v58  ;;  %v1161_v58 = vadd.f32 %v1160_v25, %v1159_v14  ;;  %v1099_v14 = vsel %vm686_vm6, %v1086_v45, %v1098_v32  ;;  %v1337_v9 = vpop.f32.mrf.mxu3 }
 0x396   : > { %v1132_v2 = vmul.f32 %v3134_v31, %v2855_v3  ;;  %v1088_v57 = vperm.slane %v2855_v3, %v2511_v40  ;;  %v3137_v31 = vunpack.c.l.bf16 %v2466_v60  ;;  %v1209_v43 = vpack.c.bf16 %v1145_v7, %v1145_v7 }
 0x397   : > { %v1178_v51 = vrot.slane %v1177_v18, 2  ;;  %v1162_v41 = vrot.slane %v1161_v58, 1 }
 0x398   : > { %v1183_v56 = vsel %vm515_vm1, %v1132_v2, 0.0  ;;  %v1135_v3 = vmul.f32 %v3137_v31, %v1068_v5  ;;  %v1170_v2 = vadd.f32 %v1169_v59, %v1168_v22 }
 0x399   : > { %v1184_v8 = vadd.f32 %v1183_v56, %v1182_v46  ;;  %v1179_v0 = vadd.f32 %v1178_v51, %v1177_v18  ;;  %v1089_v46 = vsel %vm657_vm2, %v1088_v57, %v1087_v53  ;;  %v1163_v18 = vadd.f32 %v1162_v41, %v1161_v58 }
 0x39a   : > { %v1200_v26 = vsel %vm515_vm1, %v1135_v3, 0.0  ;;  %v1171_v39 = vrot.slane %v1170_v2, 1  ;;  %v1100_v21 = vsel %vm688_vm7, %v1089_v46, %v1099_v14  ;;  %v1234_v51 = vunpack.c.l.b16 %v1210_v61 }
 0x39b   : > { %v1185_v17 = vrot.slane %v1184_v8, 4  ;;  %v1180_v6 = vrot.slane %v1179_v0, 1  ;;  %v1211_v28 = vpack.c.bf16 %v1163_v18, %v1163_v18  ;;  %1364 = vrot.lane.b32.xlu1 %v1362_v52, %s2219_s21 }
 0x39c   : > { %v1172_v25 = vadd.f32 %v1171_v39, %v1170_v2 }
 0x39d   : > { %v1186_v36 = vadd.f32 %v1185_v17, %v1184_v8  ;;  %v1065_v49 = vpop.permute.xlu0 %1064 }
 0x39e   : > { %v1134_v42 = vmul.f32 %v3136_v30, %v1065_v49  ;;  %v1091_v15 = vperm.slane %v1065_v49, %v2511_v40  ;;  %v1181_v49 = vadd.f32 %v1180_v6, %v1179_v0  ;;  %v1212_v59 = vpack.c.bf16 %v1172_v25, %v1172_v25 }
 0x39f   : > { %v1187_v12 = vrot.slane %v1186_v36, 2 }
 0x3a0   : > { %v1192_v16 = vsel %vm515_vm1, %v1134_v42, 0.0  ;;  %v1092_v19 = vsel %vm657_vm2, %v1091_v15, %v1090_v24  ;;  %v1213_v33 = vpack.c.bf16 %v1181_v49, %v1181_v49  ;;  %v1236_v15 = vunpack.c.l.b16 %v1212_v59 }
 0x3a1   : > { %v1193_v4 = vadd.f32 %v1192_v16, %v1191_v1  ;;  %v1188_v23 = vadd.f32 %v1187_v12, %v1186_v36  ;;  %v1101_v22 = vsel %vm690_vm8, %v1092_v19, %v1100_v21  ;;  %v1235_v16 = vunpack.c.l.b16 %v1211_v28 }
 0x3a2   : > { %v1233_v12 = vunpack.c.l.b16 %v1209_v43  ;;  %v1237_v44 = vunpack.c.l.b16 %v1213_v33  ;;  %v1918_v43 = vld [vmem:[%s3089_s6 + $0x8] sm:$0xff] }
 0x3a3   : > { %v1194_v29 = vrot.slane %v1193_v4, 4  ;;  %v1189_v60 = vrot.slane %v1188_v23, 1  ;;  %v2977_v33 = vld [vmem:[#allocation2 + $0x8] sm:$0xff]  ;;  %1456 = vmatpush.bf16.msrb.mxu0 %v1918_v43 }
 0x3a4   : > { %v1241_v63 = vsel %vm680_vm3, %v1234_v51, %v1233_v12 }
 0x3a5   : > { %v1195_v56 = vadd.f32 %v1194_v29, %v1193_v4  ;;  %v1071_v54 = vpop.permute.xlu0 %1070  ;;  %v1190_v30 = vadd.f32 %v1189_v60, %v1188_v23  ;;  %v1242_v3 = vsel %vm682_vm4, %v1235_v16, %v1241_v63 }
 0x3a6   : > { %v1094_v8 = vperm.slane %v1071_v54, %v2511_v40  ;;  %v1136_v47 = vmul.f32 %v3138_v34, %v1071_v54  ;;  %v1243_v45 = vsel %vm684_vm5, %v1236_v15, %v1242_v3 }
 0x3a7   : > { %v1196_v62 = vrot.slane %v1195_v56, 2  ;;  %v1214_v48 = vpack.c.bf16 %v1190_v30, %v1190_v30  ;;  %v1244_v29 = vsel %vm686_vm6, %v1237_v44, %v1243_v45 }
 0x3a8   : > { %v1095_v17 = vsel %vm657_vm2, %v1094_v8, %v1093_v55  ;;  %v1201_v40 = vsel %vm515_vm1, %v1136_v47, 0.0 }
 0x3a9   : > { %v1197_v53 = vadd.f32 %v1196_v62, %v1195_v56  ;;  %v1202_v10 = vadd.f32 %v1201_v40, %v1200_v26  ;;  %v1102_v11 = vsel %vm692_vm9, %v1095_v17, %v1101_v22  ;;  %v1238_v24 = vunpack.c.l.b16 %v1214_v48  ;;  %v1917_v48 = vld [vmem:[%s3089_s6] sm:$0xff] }
 0x3aa   : > { %1104 = vst.msk [vmem:[%s3112_s22] sm:$0xff] %vm3139_vm10, %v1102_v11  ;;  %1457 = vmatpush.bf16.msrb.mxu0 %v1917_v48 }
 0x3ab   : > { %v1198_v5 = vrot.slane %v1197_v53, 1  ;;  %v1203_v36 = vrot.slane %v1202_v10, 4  ;;  %v1245_v32 = vsel %vm688_vm7, %v1238_v24, %v1244_v29 }
 0x3ad   : > { %v1204_v42 = vadd.f32 %v1203_v36, %v1202_v10  ;;  %v1199_v1 = vadd.f32 %v1198_v5, %v1197_v53 }
 0x3af   : > { %v1205_v38 = vrot.slane %v1204_v42, 2  ;;  %v1215_v58 = vpack.c.bf16 %v1199_v1, %v1199_v1  ;;  %v1880_v1 = vld [vmem:[%s3091_s8 + $0x4] sm:$0xf] }
 0x3b0   : > { %v1553_v51 = vperm.slane %v1880_v1, 3 }
 0x3b1   : > { %v1206_v57 = vadd.f32 %v1205_v38, %v1204_v42  ;;  %v1239_v31 = vunpack.c.l.b16 %v1215_v58  ;;  %v1919_v38 = vld [vmem:[%s3090_s7 + $0x10] sm:$0xff] }
 0x3b3   : > { %v1207_v4 = vrot.slane %v1206_v57, 1  ;;  %v1246_v0 = vsel %vm690_vm8, %v1239_v31, %v1245_v32  ;;  %v1547_v32 = vperm.slane %v1880_v1, 2 }
 0x3b5   : > { %v1208_v13 = vadd.f32 %v1207_v4, %v1206_v57  ;;  %v1464_v57 = vpack.c.bf16 %v2977_v33, %v2977_v33 }
 0x3b7   : > { %v1216_v2 = vpack.c.bf16 %v1208_v13, %v1208_v13 }
 0x3b9   : > { %v1240_v55 = vunpack.c.l.b16 %v1216_v2 }
 0x3bb   : > { %v1247_v46 = vsel %vm692_vm9, %v1240_v55, %v1246_v0 }
 0x3bc   : > { %v1248_v41 = vpack.c.b16 %v1247_v46, %v1247_v46 }
 0x3be   : > { %1837 = vmatmul.msk.bf16.vlgmr.msra.gmra.mxu1 %vm515_vm1, %v1248_v41  ;;  %1891 = vmatmul.msk.bf16.vlgmr.msrb.gmra.mxu2 %vm515_vm1, %v1248_v41 }
 0x3da   : > { %v1301_v23 = vpop.f32.mrf.mxu2 }
 0x3e2   : > { %v1303_v19 = vpop.f32.mrf.mxu2 }
 0x3fb   : > { %v1390_v18 = vpop.permute.xlu0 %1389 }
 0x405   : > { %v1401_v53 = vpop.permute.xlu1 %1400 }
 0x40d   : > { %v1365_v49 = vpop.permute.xlu1 %1364 }
 0x43b   : > { %v1273_v56 = vpop.f32.mrf.mxu1 }
 0x43c   : > { %v1302_v54 = vadd.f32 %v1301_v23, %v1273_v56  ;;  %v1522_v23 = vperm.slane %v1880_v1, 1 }
 0x43e   : > { %v1340_v14 = vadd.f32 %v2911_v20, %v1302_v54  ;;  %v1392_v7 = vadd.f32 %v1390_v18, %v1302_v54  ;;  %v1501_v54 = vperm.slane %v1880_v1, 0  ;;  %v1921_v1 = vld [vmem:[%s3092_s9] sm:$0xff] }
 0x440   : > { %v1342_v8 = vadd.f32 %v1341_v50, %v1340_v14  ;;  %v1367_v52 = vadd.f32 %v1365_v49, %v1340_v14 }
 0x441   : > { %v2959_v34 = vpop.f32.mrf.mxu2 }
 0x442   : > { %v1856_v47 = vmul.f32 -1.442695, %v1342_v8  ;;  %v1857_v61 = vmul.f32 -1.442695, %v1367_v52 }
 0x443   : > { %v1275_v37 = vpop.f32.mrf.mxu1 }
 0x444   : > { %2073 = vpow2.f32 %v1856_v47 }
 0x449   : > { %v1619_v26 = vpop.f32.mrf.mxu2 }
 0x44a   : > { %v2074_v39 = vpop.eup %2073 }
 0x44b   : > { %v1346_v21 = vadd.f32 1.0, %v2074_v39 }
 0x44d   : > { %2075 = vrcp.f32 %v1346_v21  ;;  %v1358_v22 = vand.u32 2147483648, %v1346_v21  ;;  %v1356_v40 = vand.u32 2147483647, %v1346_v21  ;;  %vm1352_vm3 = vweird.f32 %v1346_v21 }
 0x44f   : > { %v1359_v20 = vor.u32 1.1754944e-38, %v1358_v22  ;;  %vm1357_vm5 = vcmp.eq.f32.partialorder %v1356_v40, 8.507059e+37 }
 0x453   : > { %v2076_v62 = vpop.eup %2075 }
 0x454   : > { %v1348_v9 = vmul.f32 %v2076_v62, %v1346_v21  ;;  %vm1353_vm2 = vweird.f32 %v2076_v62 }
 0x455   : > { %vm1354_vm4 = vmor %vm1352_vm3, %vm1353_vm2 }
 0x456   : > { %v1349_v6 = vsub.f32 1.0, %v1348_v9 }
 0x458   : > { %v1350_v17 = vmul.f32 %v2076_v62, %v1349_v6 }
 0x45a   : > { %v1351_v35 = vadd.f32 %v2076_v62, %v1350_v17 }
 0x45c   : > { %v1355_v60 = vsel %vm1354_vm4, %v2076_v62, %v1351_v35 }
 0x45d   : > { %v1360_v10 = vsel %vm1357_vm5, %v1359_v20, %v1355_v60 }
 0x45e   : > { %v1403_v11 = vmul.f32 %v1401_v53, %v1360_v10 }
 0x460   : > { %1405 = vrot.lane.b32.xlu2 %v1403_v11, %s2218_s29 }
 0x468   : > { %1417 = vrot.lane.b32.xlu2 %v2756_v27, %s2219_s21  ;;  %v1920_v27 = vld [vmem:[%s3090_s7 + $0x18] sm:$0xff] }
 0x469   : > { %1491 = vmatpush.bf16.msrb.mxu1 %v1920_v27  ;;  %v1922_v27 = vld [vmem:[%s3092_s9 + $0x8] sm:$0xff] }
 0x46a   : > { %1645 = vmatpush.bf16.msrb.mxu3 %v1922_v27 }
 0x46d   : > { %1492 = vmatpush.bf16.msrb.mxu1 %v1919_v38 }
 0x46e   : > { %1646 = vmatpush.bf16.msrb.mxu3 %v1921_v1 }
 0x470   : > { %1879 = vmatmul.msk.bf16.vlgmr.msrb.gmra.mxu1 %vm515_vm1, %v1464_v57 }
 0x4ba   : > { %v1406_v25 = vpop.permute.xlu2 %1405 }
 0x4bb   : > { %v1408_v5 = vadd.f32 %v1406_v25, %v1392_v7 }
 0x4bd   : > { %2077 = vtanh.f32 %v1408_v5 }
 0x4be   : > { %2079 = vpow2.f32 %v1857_v61 }
 0x4c2   : > { %v1418_v13 = vpop.permute.xlu2 %1417 }
 0x4c3   : > { %v2078_v36 = vpop.eup %2077 }
 0x4c4   : > { %1412 = vrot.lane.b32.xlu0 %v2078_v36, %s2220_s27  ;;  %v2080_v30 = vpop.eup %2079 }
 0x4c5   : > { %v1371_v42 = vadd.f32 1.0, %v2080_v30 }
 0x4c7   : > { %2081 = vrcp.f32 %v1371_v42  ;;  %v1383_v15 = vand.u32 2147483648, %v1371_v42  ;;  %vm1377_vm7 = vweird.f32 %v1371_v42  ;;  %v1381_v4 = vand.u32 2147483647, %v1371_v42 }
 0x4c9   : > { %v1384_v63 = vor.u32 1.1754944e-38, %v1383_v15  ;;  %vm1382_vm9 = vcmp.eq.f32.partialorder %v1381_v4, 8.507059e+37 }
 0x4cc   : > { %1555 = vrot.lane.b32.xlu0 %v1553_v51, %s2218_s29 }
 0x4cd   : > { %v2082_v28 = vpop.eup %2081 }
 0x4ce   : > { %v1373_v59 = vmul.f32 %v2082_v28, %v1371_v42  ;;  %vm1378_vm6 = vweird.f32 %v2082_v28 }
 0x4cf   : > { %vm1379_vm8 = vmor %vm1377_vm7, %vm1378_vm6 }
 0x4d0   : > { %v1374_v16 = vsub.f32 1.0, %v1373_v59 }
 0x4d2   : > { %v1375_v58 = vmul.f32 %v2082_v28, %v1374_v16 }
 0x4d4   : > { %v1376_v12 = vadd.f32 %v2082_v28, %v1375_v58 }
 0x4d6   : > { %v1380_v44 = vsel %vm1379_vm8, %v2082_v28, %v1376_v12 }
 0x4d7   : > { %v1385_v24 = vsel %vm1382_vm9, %v1384_v63, %v1380_v44 }
 0x4d8   : > { %v1410_v31 = vsub.f32 1.0, %v1385_v24  ;;  %v1420_v2 = vmul.f32 %v1418_v13, %v1385_v24 }
 0x4ed   : > { %v1494_v46 = vpop.f32.mrf.mxu1 }
 0x4f5   : > { %v1496_v19 = vpop.f32.mrf.mxu1 }
 0x536   : > { %v1413_v3 = vpop.permute.xlu0 %1412 }
 0x537   : > { %v1415_v45 = vmul.f32 %v1413_v3, %v1410_v31 }
 0x539   : > { %v1421_v29 = vadd.f32 %v1420_v2, %v1415_v45 }
 0x53b   : > { %v1427_v55 = vpack.c.bf16 %v1421_v29, %v1421_v29 }
 0x53d   : > { %1433 = vrot.lane.b32.xlu1 %v1427_v55, %s2220_s27 }
 0x53e   : > { %v1556_v0 = vpop.permute.xlu0 %1555 }
 0x53f   : > { %v1558_v41 = vadd.f32 %v1556_v0, %v1494_v46 }
 0x541   : > { %1560 = vrot.lane.b32.xlu2 %v1558_v41, %s2218_s29 }
 0x545   : > { %1549 = vrot.lane.b32.xlu1 %v1547_v32, %s2218_s29 }
 0x549   : > { %1524 = vrot.lane.b32.xlu2 %v1522_v23, %s2219_s21 }
 0x59b   : > { %v1561_v60 = vpop.permute.xlu2 %1560 }
 0x5a3   : > { %v1525_v36 = vpop.permute.xlu2 %1524 }
 0x5af   : > { %v1434_v56 = vpop.permute.xlu1 %1433 }
 0x5b0   : > { %1866 = vmatmul.msk.bf16.vlgmr.msrb.gmra.mxu0 %vm515_vm1, %v1434_v56 }
 0x5b7   : > { %v1550_v11 = vpop.permute.xlu1 %1549 }
 0x62d   : > { %v1459_v50 = vpop.f32.mrf.mxu0 }
 0x62e   : > { %v1500_v14 = vadd.f32 %v1494_v46, %v1459_v50  ;;  %v1552_v18 = vadd.f32 %v1550_v11, %v1459_v50 }
 0x630   : > { %v1502_v8 = vadd.f32 %v1501_v54, %v1500_v14  ;;  %v1527_v49 = vadd.f32 %v1525_v36, %v1500_v14 }
 0x632   : > { %v1881_v47 = vmul.f32 -1.442695, %v1502_v8  ;;  %v1882_v52 = vmul.f32 -1.442695, %v1527_v49 }
 0x634   : > { %2083 = vpow2.f32 %v1881_v47 }
 0x635   : > { %v1461_v37 = vpop.f32.mrf.mxu0 }
 0x63a   : > { %v2084_v26 = vpop.eup %2083 }
 0x63b   : > { %v1506_v39 = vadd.f32 1.0, %v2084_v26 }
 0x63d   : > { %2085 = vrcp.f32 %v1506_v39  ;;  %v1518_v6 = vand.u32 2147483648, %v1506_v39  ;;  %v1516_v17 = vand.u32 2147483647, %v1506_v39  ;;  %vm1512_vm0 = vweird.f32 %v1506_v39 }
 0x63f   : > { %v1519_v35 = vor.u32 1.1754944e-38, %v1518_v6  ;;  %vm1517_vm12 = vcmp.eq.f32.partialorder %v1516_v17, 8.507059e+37 }
 0x643   : > { %v2086_v21 = vpop.eup %2085 }
 0x644   : > { %v1508_v62 = vmul.f32 %v2086_v21, %v1506_v39  ;;  %vm1513_vm15 = vweird.f32 %v2086_v21 }
 0x645   : > { %vm1514_vm11 = vmor %vm1512_vm0, %vm1513_vm15 }
 0x646   : > { %v1509_v9 = vsub.f32 1.0, %v1508_v62 }
 0x648   : > { %v1510_v22 = vmul.f32 %v2086_v21, %v1509_v9 }
 0x64a   : > { %v1511_v40 = vadd.f32 %v2086_v21, %v1510_v22 }
 0x64c   : > { %v1515_v20 = vsel %vm1514_vm11, %v2086_v21, %v1511_v40 }
 0x64d   : > { %v1520_v53 = vsel %vm1517_vm12, %v1519_v35, %v1515_v20 }
 0x64e   : > { %v1563_v10 = vmul.f32 %v1561_v60, %v1520_v53 }
 0x650   : > { %1565 = vrot.lane.b32.xlu0 %v1563_v10, %s2218_s29 }
 0x658   : > { %1577 = vrot.lane.b32.xlu0 %v2977_v33, %s2219_s21  ;;  %s1678_s21 = scalar_lea.hbm %s3095_s12, %s1903_s18 }
 0x6c2   : > { %v1566_v7 = vpop.permute.xlu0 %1565 }
 0x6c3   : > { %v1568_v25 = vadd.f32 %v1566_v7, %v1552_v18 }
 0x6c5   : > { %2087 = vtanh.f32 %v1568_v25 }
 0x6c6   : > { %2089 = vpow2.f32 %v1882_v52 }
 0x6ca   : > { %v1578_v58 = vpop.permute.xlu0 %1577 }
 0x6cb   : > { %v2088_v5 = vpop.eup %2087 }
 0x6cc   : > { %1572 = vrot.lane.b32.xlu1 %v2088_v5, %s2220_s27  ;;  %v2090_v61 = vpop.eup %2089 }
 0x6cd   : > { %v1531_v30 = vadd.f32 1.0, %v2090_v61 }
 0x6cf   : > { %2091 = vrcp.f32 %v1531_v30  ;;  %v1543_v33 = vand.u32 2147483648, %v1531_v30  ;;  %vm1537_vm14 = vweird.f32 %v1531_v30  ;;  %v1541_v51 = vand.u32 2147483647, %v1531_v30 }
 0x6d1   : > { %v1544_v57 = vor.u32 1.1754944e-38, %v1543_v33  ;;  %vm1542_vm2 = vcmp.eq.f32.partialorder %v1541_v51, 8.507059e+37 }
 0x6d4   : > { %1423 = vrot.lane.b32.xlu1 %v1421_v29, %s2220_s27  ;;  %v2024_v29 = vld [vmem:[%s3094_s11] ss:$0 sm:$0xff] }
 0x6d5   : > { %v2092_v42 = vpop.eup %2091 }
 0x6d6   : > { %v1533_v28 = vmul.f32 %v2092_v42, %v1531_v30  ;;  %vm1538_vm13 = vweird.f32 %v2092_v42 }
 0x6d7   : > { %vm1539_vm10 = vmor %vm1537_vm14, %vm1538_vm13 }
 0x6d8   : > { %v1534_v43 = vsub.f32 1.0, %v1533_v28 }
 0x6da   : > { %v1535_v59 = vmul.f32 %v2092_v42, %v1534_v43 }
 0x6dc   : > { %v1536_v38 = vadd.f32 %v2092_v42, %v1535_v59 }
 0x6de   : > { %v1540_v48 = vsel %vm1539_vm10, %v2092_v42, %v1536_v38 }
 0x6df   : > { %v1545_v16 = vsel %vm1542_vm2, %v1544_v57, %v1540_v48 }
 0x6e0   : > { %v1570_v12 = vsub.f32 1.0, %v1545_v16  ;;  %v1580_v4 = vmul.f32 %v1578_v58, %v1545_v16 }
 0x73e   : > { %v1573_v15 = vpop.permute.xlu1 %1572 }
 0x73f   : > { %v1575_v44 = vmul.f32 %v1573_v15, %v1570_v12 }
 0x741   : > { %v1581_v63 = vadd.f32 %v1580_v4, %v1575_v44 }
 0x743   : > { %1583 = vrot.lane.b32.xlu0 %v1581_v63, %s2220_s27  ;;  %v1587_v24 = vpack.c.bf16 %v1581_v63, %v1581_v63 }
 0x745   : > { %1622 = vrot.lane.b32.xlu2 %v1587_v24, %s2220_s27 }
 0x746   : > { %v1424_v13 = vpop.permute.xlu1 %1423 }
 0x747   : > { %1426 = vst.msk [vmem:[#allocation2] sm:$0xff] %vm515_vm1, %v1424_v13 }
 0x74e   : > { %v1658_v31 = vld [vmem:[#allocation2] sm:$0xff] }
 0x74f   : > { %1660 = vst.msk [vmem:[#allocation5] sm:$0xff] %vm515_vm1, %v1658_v31 }
 0x79f   : > { %v1623_v3 = vpop.permute.xlu2 %1622 }
 0x7a0   : > { %1900 = vmatmul.msk.bf16.vlgmr.msrb.gmra.mxu3 %vm515_vm1, %v1623_v3 }
 0x7b5   : > { %v1584_v2 = vpop.permute.xlu0 %1583 }
 0x7b6   : > { %1586 = vst.msk [vmem:[#allocation2 + $0x8] sm:$0xff] %vm515_vm1, %v1584_v2 }
 0x7bd   : > { %v1659_v45 = vld [vmem:[#allocation2 + $0x8] sm:$0xff] }
 0x7be   : > { %1661 = vst.msk [vmem:[#allocation5 + $0x8] sm:$0xff] %vm515_vm1, %v1659_v45 }
 0x7bf   : > { %1966 = dma.vmem_to_hbm [thread:$0]  (%p304_p2), %s1692_s15, 256, %s1694_s25, [#allocation6], %s2222_s28, %s2222_s28, %s2223_s20  }
 0x7c0   : > { %s1682_s15 = sshll.u32 %s1678_s21, 4  ;;  %s3141_s25 = scalar_lea.vmem [#allocation7], %s2350_s26  ;;  %s1683_s15 = int_to_ptr.hbm [resolvable:$true] %s1682_s15 }
 0x7c1   : > { %s3030_s28 = sshll.u32 %s3141_s25, 4  ;;  %s1710_s20 = sshll.u32 %s1706_s19, 4  ;;  %s1709_s28 = int_to_ptr.vmem [resolvable:$true] %s3030_s28  ;;  %s3033_s20 = int_to_ptr.hbm [resolvable:$true] %s1710_s20 }
 0x7c2   : > { %s2135_s18 = sshra.s32 %s1683_s15, 4  ;;  %s2141_s21 = scalar_lea.hbm %s3095_s12, 32  ;;  %s2136_s18 = int_to_ptr.hbm [resolvable:$true] %s2135_s18 }
 0x7c3   : > { %s2137_s3 = scalar_lea.hbm %s2136_s18, 8  ;;  %p2142_p1 = scmp.lt.s32.totalorder %s2136_s18, %s3095_s12 }
 0x7c4   : > { %p2138_p12 = scmp.ne.s32.totalorder %s2136_s18, %s2137_s3  ;;  %p2143_p3 = scmp.lt.s32.totalorder %s2141_s21, %s2137_s3 }
 0x7c6   : > { %p2139_p13 = pnand %p2138_p12, %p2338_p5  ;;  %p2144_p4 = por %p2143_p3, %p2142_p1 }
 0x7c8   : > { %p2140_p0 = pneg %p2139_p13 }
 0x7ca   : > { %p2145_p7 = pnand %p2144_p4, %p2140_p0 }
 0x823   : > { %v1648_v55 = vpop.f32.mrf.mxu3 }
 0x824   : > { %v1649_v32 = vadd.f32 %v1648_v55, %v2959_v34 }
 0x826   : > { %v1656_v0 = vadd.f32 %v2024_v29, %v1649_v32 }
 0x828   : > { %1657 = vst [vmem:[%s3142_s0] sm:$0xff] %v1656_v0 }
 0x829   : > { %2148 = shalt.err (!%p2145_p7)
}
 0x82a   : > { %1964 = dma.vmem_to_hbm [thread:$0]  (%p2338_p5), %s1681_s4, 128, %s1683_s15, %s1663_s1  }
 0x82b   : > { %s2163_s2 = sshra.s32 %s3033_s20, 4  ;;  %s2169_s0 = scalar_lea.hbm %s3097_s14, 32  ;;  %s2164_s2 = int_to_ptr.hbm [resolvable:$true] %s2163_s2 }
 0x82c   : > { %s2165_s26 = scalar_lea.hbm %s2164_s2, 8  ;;  %p2170_p11 = scmp.lt.s32.totalorder %s2164_s2, %s3097_s14 }
 0x82d   : > { %p2166_p8 = scmp.ne.s32.totalorder %s2164_s2, %s2165_s26  ;;  %p2171_p12 = scmp.lt.s32.totalorder %s2169_s0, %s2165_s26 }
 0x82f   : > { %p2167_p9 = pnand %p2166_p8, %p2338_p5  ;;  %p2172_p13 = por %p2171_p12, %p2170_p11 }
 0x831   : > { %p2168_p10 = pneg %p2167_p9 }
 0x833   : > { %p2173_p0 = pnand %p2172_p13, %p2168_p10 }
 0x835   : > { %2176 = shalt.err (!%p2173_p0)
}
 0x836   : > { %1967 = dma.vmem_to_hbm [thread:$0]  (%p2338_p5), %s1709_s28, 128, %s3033_s20, %s1663_s1   ;;  %v1650_v34 = vpop.f32.mrf.mxu3 }
 0x837   : > { %2194 = dma.done.wait (%p304_p2), [#allocation6], 256  }
 0x838   : > { %2196 = vsyncadd (%p304_p2), [#allocation6], 4294967040 }
 0x839 PF: > { %p1981_p1 = scmp.ge.s32.totalorder %s2215_s16, 2  ;;  %s3143_s4 = sadd.s32 4294967294, %s2215_s16  }
 0x83a   : > { %s1727_s15 = sand.u32 1, %s3143_s4  }
 0x83b   : > { %p1973_p3 = pnand %p1981_p1, %p2342_p6  ;;  %s1728_s23 = scalar_lea.sflag [#allocation4], %s1727_s15 }
 0x83d   : > { %p1974_p4 = pneg %p1973_p3 }
 0x83f   : > { %2198 = dma.done.wait (%p1974_p4), %s1728_s23, 256  }
 0x840   : > { %2200 = vsyncadd (%p1974_p4), %s1728_s23, 4294967040  ;;  %s3144_s16 = sld [smem:[#allocation12_spill]] }
 0x841   : > { %s3145_s29 = sld [smem:[#allocation10_spill]] }
 0x842   : > { %s3146_s30 = sld [smem:[#allocation11_spill]] }
 0x843   : > { %s3147_s15 = sld [smem:[#allocation13_spill]] }
 0x846   : > { %p26_p5 = scmp.ge.s32.totalorder %s3144_s16, 6  }
 0x848   :  { %28 = sbr.rel (!%p26_p5) target bundleno = 10 (0xa), region = 133 }
 0x84d   :  { %1744 = vsyncpa [#allocation4], 1 }
 0x84e   :  { %1746 = vsyncpa [#allocation4 + $0x1], 1 }
 0x84f   :  { %1747 = vsyncpa [#allocation6], 1 }

</bundles_post_ra>
